<compile_context>
chip_gen: v5e
topology: v5e:2x2
jax: 0.10.0
libtpu: 0.0.40
codegen_flags: <defaults>
</compile_context>

<pallas_src>
import jax
import jax.numpy as jnp
from jax.experimental import pallas as pl
from jax.experimental.pallas import tpu as pltpu


def _time_lstm_kernel(x_ref, wx_ref, wh_ref, b_ref, out_ref, xw_ref, h_ref, c_ref):
    # x_ref  : (T, Bt, I)       input slice for this batch tile (matmul dtype)
    # wx_ref : (I, 4*Hp)        Wx^T, gate-major [f,i,o,g], lane-padded (matmul dtype)
    # wh_ref : (Hp, 4*Hp)       Wh^T, same layout (matmul dtype)
    # b_ref  : (1, 4*Hp)        bias, f32, same layout
    # out_ref: (Bt, T, Hp)      per-step hidden state (pre-update), f32
    # xw_ref : (T*Bt, 4*Hp)     VMEM scratch: fused input projection, f32
    # h_ref, c_ref: (Bt, Hp)    VMEM scratch carries, f32
    T, Bt, I = x_ref.shape
    Hp4 = wh_ref.shape[1]
    Hp = Hp4 // 4
    f32 = jnp.float32
    mm_dtype = wh_ref.dtype

    # ---- prologue: input projection for ALL timesteps as one big GEMM -------
    # (off the serial recurrence path; M = T*Bt keeps the MXU rows busy)
    x2d = x_ref[...].reshape(T * Bt, I)
    xw_ref[...] = (jnp.dot(x2d, wx_ref[...], preferred_element_type=f32)
                   + b_ref[...])

    h_ref[...] = jnp.zeros((Bt, Hp), f32)
    c_ref[...] = jnp.zeros((Bt, Hp), f32)

    # Static unroll over T: static indices keep the (Bt, T, Hp) output stores
    # trivially legal and lane-dense.  T here is the module's sequence length
    # (~20).  TODO(synk): for very long T, add a T-chunk "arbitrary" grid axis
    # with h/c carried in these scratch refs to bound unroll/code size and the
    # xw/out VMEM footprint (v7x has 64 MiB physical / 32 MiB scoped VMEM).
    for t in range(T):
        h = h_ref[...]
        out_ref[:, t, :] = h.astype(out_ref.dtype)       # h BEFORE this step's update

        xw_t = xw_ref[pl.ds(t * Bt, Bt), :]              # static, sublane-aligned slice
        a = xw_t + jnp.dot(h.astype(mm_dtype), wh_ref[...],
                           preferred_element_type=f32)
        A = jnp.tanh(a)

        # gate order [f, i, o, g]: one wide sigmoid + one tanh (fewer EUP streams);
        # every slice lands on a 128-lane multiple (whole vregs, no shuffles).
        sig = jax.nn.sigmoid(A[:, :3 * Hp])
        f = sig[:, 0 * Hp:1 * Hp]
        i = sig[:, 1 * Hp:2 * Hp]
        o = sig[:, 2 * Hp:3 * Hp]
        g = jnp.tanh(A[:, 3 * Hp:4 * Hp])

        c = c_ref[...]
        c_ref[...] = f * c + g * i
        h_ref[...] = o * jnp.tanh(c)                     # tanh(OLD c) — reference quirk


def _pick_b_tile(bp, max_tile=256):
    """Largest batch tile <= max_tile that divides bp (bp is a multiple of 8)."""
    if bp <= max_tile:
        return bp
    for t in range(max_tile, 0, -8):
        if bp % t == 0:
            return t
    return bp


def time_lstm(X, Wx, Wh, bias, *, matmul_dtype=jnp.float32):
    """X: (B, T, I).  Wx: (4H, I), Wh: (4H, H), bias: (4H,)  (torch layout).
    Returns h_results: (B, T, H).

    matmul_dtype: dtype of the MXU operands (weights / x / h).  Use
    jnp.bfloat16 at scale (bf16-native MXU, half the weight VMEM and x HBM
    traffic); accumulation and all activation/state math stay in float32.
    """
    B, T, I = X.shape
    H4 = Wx.shape[0]
    H = H4 // 4
    Hp = ((H + 127) // 128) * 128          # pad each gate to a whole 128-lane group
    f32 = jnp.float32

    # --- gate-major, lane-padded weight layout, gate order [f, i, o, g] -------
    # torch row order is [f, g, i, o]; permute so the 3 sigmoid gates are contiguous.
    perm = jnp.array((0, 2, 3, 1))

    def pad_gates(W):                       # (4H, n) -> (4Hp, n)
        Wg = W.astype(f32).reshape(4, H, -1)[perm]
        Wg = jnp.pad(Wg, ((0, 0), (0, Hp - H), (0, 0)))   # zero rows for padded lanes
        return Wg.reshape(4 * Hp, -1)

    Wx_p = pad_gates(Wx)                                            # (4Hp, I)
    Wh_p = jnp.pad(pad_gates(Wh), ((0, 0), (0, Hp - H)))            # (4Hp, Hp)
    b_g = bias.astype(f32).reshape(4, H)[perm]
    b_p = jnp.pad(b_g, ((0, 0), (0, Hp - H))).reshape(1, 4 * Hp)    # (1, 4Hp), f32

    Wx_t = Wx_p.T.astype(matmul_dtype)                              # (I, 4Hp)
    Wh_t = Wh_p.T.astype(matmul_dtype)                              # (Hp, 4Hp)

    # --- batch padding / tiling -----------------------------------------------
    # Pad batch to a sublane multiple; X itself is tiny (I << 4Hp), so the
    # (T, B, I) transpose+pad here is cheap (unlike materializing XW was).
    Bp = ((B + 7) // 8) * 8
    X_t = jnp.transpose(X.astype(matmul_dtype), (1, 0, 2))          # (T, B, I)
    if Bp != B:
        X_t = jnp.pad(X_t, ((0, 0), (0, Bp - B), (0, 0)))

    # Up to 256 batch rows per tile (full MXU on v6e/v7x; use 128 for v5e).
    # Multiple tiles (n_b >= 2) let v7x's second TensorCore engage via "parallel".
    B_tile = _pick_b_tile(Bp, 256)
    n_b = Bp // B_tile

    out = pl.pallas_call(
        _time_lstm_kernel,
        out_shape=jax.ShapeDtypeStruct((Bp, T, Hp), f32),
        grid_spec=pltpu.PrefetchScalarGridSpec(
            num_scalar_prefetch=0,
            grid=(n_b,),
            in_specs=[
                pl.BlockSpec((T, B_tile, I), lambda b: (0, b, 0)),      # x tile
                pl.BlockSpec((I, 4 * Hp), lambda b: (0, 0)),            # Wx^T
                pl.BlockSpec((Hp, 4 * Hp), lambda b: (0, 0)),           # Wh^T
                pl.BlockSpec((1, 4 * Hp), lambda b: (0, 0)),            # bias
            ],
            out_specs=pl.BlockSpec((B_tile, T, Hp), lambda b: (b, 0, 0)),
            scratch_shapes=[
                pltpu.VMEM((T * B_tile, 4 * Hp), f32),   # fused input projection
                pltpu.VMEM((B_tile, Hp), f32),           # h carry
                pltpu.VMEM((B_tile, Hp), f32),           # c carry
            ],
        ),
        compiler_params=pltpu.CompilerParams(
            dimension_semantics=("parallel",),           # batch tiles are independent
        ),
    )(X_t, Wx_t, Wh_t, b_p)

    # TODO(synk): stateful=True (caller-provided hs/cs) is not wired through;
    # this implements the module's default zero-initialized path.
    return out[:B, :, :H]


def time_lstm_ref(X, Wx, Wh, bias):
    """Pure-JAX reference mirroring the PyTorch forward exactly."""
    B, T, I = X.shape
    H = Wh.shape[1]
    h = jnp.zeros((B, H), jnp.float32)
    c = jnp.zeros((B, H), jnp.float32)
    outs = []
    for t in range(T):
        outs.append(h)
        a = X[:, t, :] @ Wx.T + h @ Wh.T + bias
        A = jnp.tanh(a)
        f = jax.nn.sigmoid(A[:, :H])
        g = jnp.tanh(A[:, H:2 * H])
        i = jax.nn.sigmoid(A[:, 2 * H:3 * H])
        o = jax.nn.sigmoid(A[:, 3 * H:])
        c_next = f * c + g * i
        h_next = o * jnp.tanh(c)
        h, c = h_next, c_next
    return jnp.stack(outs, axis=1)


if __name__ == "__main__":
    key = jax.random.PRNGKey(0)

    # --- run 1: small shapes, f32 MXU operands, tight tolerance ---------------
    B, T, I, H = 8, 8, 16, 32
    k1, k2, k3, k4, key = jax.random.split(key, 5)
    X = jax.random.normal(k1, (B, T, I), dtype=jnp.float32)
    Wx = jax.random.normal(k2, (4 * H, I), dtype=jnp.float32) * 0.1   # linear_x.weight
    Wh = jax.random.normal(k3, (4 * H, H), dtype=jnp.float32) * 0.1   # linear_h.weight
    bias = jax.random.normal(k4, (4 * H,), dtype=jnp.float32) * 0.1   # bias param

    out = jax.block_until_ready(time_lstm(X, Wx, Wh, bias))
    ref = time_lstm_ref(X, Wx, Wh, bias)
    assert out.shape == (B, T, H)
    assert jnp.allclose(out, ref, atol=1e-4, rtol=1e-4), "f32 kernel mismatch vs reference"

    # --- run 2: module-like shapes (B=10 -> padded to 16, H=100 -> padded to 128,
    #            T=20), bf16 MXU operands with f32 accumulation ----------------
    B2, T2, I2, H2 = 10, 20, 16, 100
    k1, k2, k3, k4, key = jax.random.split(key, 5)
    X2 = jax.random.normal(k1, (B2, T2, I2), dtype=jnp.float32)
    Wx2 = jax.random.normal(k2, (4 * H2, I2), dtype=jnp.float32) * 0.1
    Wh2 = jax.random.normal(k3, (4 * H2, H2), dtype=jnp.float32) * 0.1
    bias2 = jax.random.normal(k4, (4 * H2,), dtype=jnp.float32) * 0.1

    out2 = jax.block_until_ready(
        time_lstm(X2, Wx2, Wh2, bias2, matmul_dtype=jnp.bfloat16))
    ref2 = time_lstm_ref(X2, Wx2, Wh2, bias2)
    assert out2.shape == (B2, T2, H2)
    max_err = float(jnp.max(jnp.abs(out2 - ref2)))
    assert max_err < 5e-2, f"bf16 kernel mismatch vs reference (max abs err {max_err})"

    print("KERNEL_OK")
</pallas_src>

<mosaic_0001>
module attributes {stable_mosaic.version = 11 : i64} {
  func.func @_time_lstm_kernel(%arg0: i32, %arg1: memref<8x8x16xf32, #tpu.memory_space<vmem>>, %arg2: memref<16x512xf32, #tpu.memory_space<vmem>>, %arg3: memref<128x512xf32, #tpu.memory_space<vmem>>, %arg4: memref<1x512xf32, #tpu.memory_space<vmem>>, %arg5: memref<8x8x128xf32, #tpu.memory_space<vmem>>, %arg6: memref<64x512xf32, #tpu.memory_space<vmem>>, %arg7: memref<8x128xf32, #tpu.memory_space<vmem>>, %arg8: memref<8x128xf32, #tpu.memory_space<vmem>>) attributes {dimension_semantics = [#tpu.dimension_semantics<parallel>], iteration_bounds = array<i64: 1>, scalar_prefetch = 0 : i64, scratch_operands = 3 : i64, tpu.core_type = #tpu.core_type<tc>, window_params = [{transform_indices = @transform_0, window_bounds = array<i64: 8, 8, 16>}, {pipeline_mode = #tpu.pipeline_mode<synchronous>, transform_indices = @transform_1, window_bounds = array<i64: 16, 512>}, {pipeline_mode = #tpu.pipeline_mode<synchronous>, transform_indices = @transform_2, window_bounds = array<i64: 128, 512>}, {pipeline_mode = #tpu.pipeline_mode<synchronous>, transform_indices = @transform_3, window_bounds = array<i64: 1, 512>}, {transform_indices = @transform_4, window_bounds = array<i64: 8, 8, 128>}]} {
    %c0 = arith.constant 0 : index
    %c0_0 = arith.constant 0 : index
    %c0_1 = arith.constant 0 : index
    %0 = vector.load %arg1[%c0, %c0_0, %c0_1] : memref<8x8x16xf32, #tpu.memory_space<vmem>>, vector<8x8x16xf32>
    %1 = vector.shape_cast %0 : vector<8x8x16xf32> to vector<64x16xf32>
    %c0_2 = arith.constant 0 : index
    %c0_3 = arith.constant 0 : index
    %2 = vector.load %arg2[%c0_2, %c0_3] : memref<16x512xf32, #tpu.memory_space<vmem>>, vector<16x512xf32>
    %cst = arith.constant dense<0.000000e+00> : vector<64x512xf32>
    %3 = tpu.matmul %1, %2, %cst {dimension_numbers = #tpu.dot_dimension_numbers<[1], [0], [0], [1], [0, 0, 1, 1], [], []>} : vector<64x16xf32>, vector<16x512xf32>, vector<64x512xf32> -> vector<64x512xf32>
    %c0_4 = arith.constant 0 : index
    %c0_5 = arith.constant 0 : index
    %4 = vector.load %arg4[%c0_4, %c0_5] : memref<1x512xf32, #tpu.memory_space<vmem>>, vector<1x512xf32>
    %5 = vector.broadcast %4 : vector<1x512xf32> to vector<64x512xf32>
    %6 = arith.addf %3, %5 : vector<64x512xf32>
    %c0_6 = arith.constant 0 : index
    %c0_7 = arith.constant 0 : index
    %7 = vector.load %arg6[%c0_6, %c0_7] : memref<64x512xf32, #tpu.memory_space<vmem>>, vector<64x512xf32>
    tpu.vector_store %arg6[%c0_6, %c0_7], %6 {strides = array<i32>} : memref<64x512xf32, #tpu.memory_space<vmem>>, vector<64x512xf32>,
    %cst_8 = arith.constant 0.000000e+00 : f32
    %8 = vector.broadcast %cst_8 : f32 to vector<8x128xf32>
    %c0_9 = arith.constant 0 : index
    %c0_10 = arith.constant 0 : index
    %9 = vector.load %arg7[%c0_9, %c0_10] : memref<8x128xf32, #tpu.memory_space<vmem>>, vector<8x128xf32>
    tpu.vector_store %arg7[%c0_9, %c0_10], %8 {strides = array<i32>} : memref<8x128xf32, #tpu.memory_space<vmem>>, vector<8x128xf32>,
    %cst_11 = arith.constant 0.000000e+00 : f32
    %10 = vector.broadcast %cst_11 : f32 to vector<8x128xf32>
    %c0_12 = arith.constant 0 : index
    %c0_13 = arith.constant 0 : index
    %11 = vector.load %arg8[%c0_12, %c0_13] : memref<8x128xf32, #tpu.memory_space<vmem>>, vector<8x128xf32>
    tpu.vector_store %arg8[%c0_12, %c0_13], %10 {strides = array<i32>} : memref<8x128xf32, #tpu.memory_space<vmem>>, vector<8x128xf32>,
    %c0_14 = arith.constant 0 : index
    %c0_15 = arith.constant 0 : index
    %12 = vector.load %arg7[%c0_14, %c0_15] : memref<8x128xf32, #tpu.memory_space<vmem>>, vector<8x128xf32>
    %c0_16 = arith.constant 0 : index
    %c0_17 = arith.constant 0 : index
    %c0_18 = arith.constant 0 : index
    %13 = vector.load %arg5[%c0_16, %c0_17, %c0_18] : memref<8x8x128xf32, #tpu.memory_space<vmem>>, vector<8x1x128xf32>
    %14 = vector.shape_cast %13 : vector<8x1x128xf32> to vector<8x128xf32>
    %15 = vector.shape_cast %12 : vector<8x128xf32> to vector<8x1x128xf32>
    tpu.vector_store %arg5[%c0_16, %c0_17, %c0_18], %15 {strides = array<i32>} : memref<8x8x128xf32, #tpu.memory_space<vmem>>, vector<8x1x128xf32>,
    %c0_19 = arith.constant 0 : index
    %c0_20 = arith.constant 0 : index
    %16 = vector.load %arg6[%c0_19, %c0_20] : memref<64x512xf32, #tpu.memory_space<vmem>>, vector<8x512xf32>
    %c0_21 = arith.constant 0 : index
    %c0_22 = arith.constant 0 : index
    %17 = vector.load %arg3[%c0_21, %c0_22] : memref<128x512xf32, #tpu.memory_space<vmem>>, vector<128x512xf32>
    %cst_23 = arith.constant dense<0.000000e+00> : vector<8x512xf32>
    %18 = tpu.matmul %12, %17, %cst_23 {dimension_numbers = #tpu.dot_dimension_numbers<[1], [0], [0], [1], [0, 0, 1, 1], [], []>} : vector<8x128xf32>, vector<128x512xf32>, vector<8x512xf32> -> vector<8x512xf32>
    %19 = arith.addf %16, %18 : vector<8x512xf32>
    %20 = math.tanh %19 : vector<8x512xf32>
    %21 = vector.extract_strided_slice %20 {offsets = [0, 0], sizes = [8, 384], strides = [1, 1]} : vector<8x512xf32> to vector<8x384xf32>
    %22 = arith.negf %21 : vector<8x384xf32>
    %23 = math.exp %22 : vector<8x384xf32>
    %cst_24 = arith.constant 1.000000e+00 : f32
    %24 = vector.broadcast %cst_24 : f32 to vector<8x384xf32>
    %25 = arith.addf %24, %23 : vector<8x384xf32>
    %26 = arith.divf %24, %25 : vector<8x384xf32>
    %27 = vector.extract_strided_slice %26 {offsets = [0, 0], sizes = [8, 128], strides = [1, 1]} : vector<8x384xf32> to vector<8x128xf32>
    %28 = vector.extract_strided_slice %26 {offsets = [0, 128], sizes = [8, 128], strides = [1, 1]} : vector<8x384xf32> to vector<8x128xf32>
    %29 = vector.extract_strided_slice %26 {offsets = [0, 256], sizes = [8, 128], strides = [1, 1]} : vector<8x384xf32> to vector<8x128xf32>
    %30 = vector.extract_strided_slice %20 {offsets = [0, 384], sizes = [8, 128], strides = [1, 1]} : vector<8x512xf32> to vector<8x128xf32>
    %31 = math.tanh %30 : vector<8x128xf32>
    %c0_25 = arith.constant 0 : index
    %c0_26 = arith.constant 0 : index
    %32 = vector.load %arg8[%c0_25, %c0_26] : memref<8x128xf32, #tpu.memory_space<vmem>>, vector<8x128xf32>
    %33 = arith.mulf %27, %32 : vector<8x128xf32>
    %34 = arith.mulf %31, %28 : vector<8x128xf32>
    %35 = arith.addf %33, %34 : vector<8x128xf32>
    %c0_27 = arith.constant 0 : index
    %c0_28 = arith.constant 0 : index
    %36 = vector.load %arg8[%c0_27, %c0_28] : memref<8x128xf32, #tpu.memory_space<vmem>>, vector<8x128xf32>
    tpu.vector_store %arg8[%c0_27, %c0_28], %35 {strides = array<i32>} : memref<8x128xf32, #tpu.memory_space<vmem>>, vector<8x128xf32>,
    %37 = math.tanh %32 : vector<8x128xf32>
    %38 = arith.mulf %29, %37 : vector<8x128xf32>
    %c0_29 = arith.constant 0 : index
    %c0_30 = arith.constant 0 : index
    %39 = vector.load %arg7[%c0_29, %c0_30] : memref<8x128xf32, #tpu.memory_space<vmem>>, vector<8x128xf32>
    tpu.vector_store %arg7[%c0_29, %c0_30], %38 {strides = array<i32>} : memref<8x128xf32, #tpu.memory_space<vmem>>, vector<8x128xf32>,
    %c0_31 = arith.constant 0 : index
    %c0_32 = arith.constant 0 : index
    %40 = vector.load %arg7[%c0_31, %c0_32] : memref<8x128xf32, #tpu.memory_space<vmem>>, vector<8x128xf32>
    %c0_33 = arith.constant 0 : index
    %c1 = arith.constant 1 : index
    %c0_34 = arith.constant 0 : index
    %41 = vector.load %arg5[%c0_33, %c1, %c0_34] : memref<8x8x128xf32, #tpu.memory_space<vmem>>, vector<8x1x128xf32>
    %42 = vector.shape_cast %41 : vector<8x1x128xf32> to vector<8x128xf32>
    %43 = vector.shape_cast %40 : vector<8x128xf32> to vector<8x1x128xf32>
    tpu.vector_store %arg5[%c0_33, %c1, %c0_34], %43 {strides = array<i32>} : memref<8x8x128xf32, #tpu.memory_space<vmem>>, vector<8x1x128xf32>,
    %c8 = arith.constant 8 : index
    %c0_35 = arith.constant 0 : index
    %44 = vector.load %arg6[%c8, %c0_35] : memref<64x512xf32, #tpu.memory_space<vmem>>, vector<8x512xf32>
    %c0_36 = arith.constant 0 : index
    %c0_37 = arith.constant 0 : index
    %45 = vector.load %arg3[%c0_36, %c0_37] : memref<128x512xf32, #tpu.memory_space<vmem>>, vector<128x512xf32>
    %cst_38 = arith.constant dense<0.000000e+00> : vector<8x512xf32>
    %46 = tpu.matmul %40, %45, %cst_38 {dimension_numbers = #tpu.dot_dimension_numbers<[1], [0], [0], [1], [0, 0, 1, 1], [], []>} : vector<8x128xf32>, vector<128x512xf32>, vector<8x512xf32> -> vector<8x512xf32>
    %47 = arith.addf %44, %46 : vector<8x512xf32>
    %48 = math.tanh %47 : vector<8x512xf32>
    %49 = vector.extract_strided_slice %48 {offsets = [0, 0], sizes = [8, 384], strides = [1, 1]} : vector<8x512xf32> to vector<8x384xf32>
    %50 = arith.negf %49 : vector<8x384xf32>
    %51 = math.exp %50 : vector<8x384xf32>
    %cst_39 = arith.constant 1.000000e+00 : f32
    %52 = vector.broadcast %cst_39 : f32 to vector<8x384xf32>
    %53 = arith.addf %52, %51 : vector<8x384xf32>
    %54 = arith.divf %52, %53 : vector<8x384xf32>
    %55 = vector.extract_strided_slice %54 {offsets = [0, 0], sizes = [8, 128], strides = [1, 1]} : vector<8x384xf32> to vector<8x128xf32>
    %56 = vector.extract_strided_slice %54 {offsets = [0, 128], sizes = [8, 128], strides = [1, 1]} : vector<8x384xf32> to vector<8x128xf32>
    %57 = vector.extract_strided_slice %54 {offsets = [0, 256], sizes = [8, 128], strides = [1, 1]} : vector<8x384xf32> to vector<8x128xf32>
    %58 = vector.extract_strided_slice %48 {offsets = [0, 384], sizes = [8, 128], strides = [1, 1]} : vector<8x512xf32> to vector<8x128xf32>
    %59 = math.tanh %58 : vector<8x128xf32>
    %c0_40 = arith.constant 0 : index
    %c0_41 = arith.constant 0 : index
    %60 = vector.load %arg8[%c0_40, %c0_41] : memref<8x128xf32, #tpu.memory_space<vmem>>, vector<8x128xf32>
    %61 = arith.mulf %55, %60 : vector<8x128xf32>
    %62 = arith.mulf %59, %56 : vector<8x128xf32>
    %63 = arith.addf %61, %62 : vector<8x128xf32>
    %c0_42 = arith.constant 0 : index
    %c0_43 = arith.constant 0 : index
    %64 = vector.load %arg8[%c0_42, %c0_43] : memref<8x128xf32, #tpu.memory_space<vmem>>, vector<8x128xf32>
    tpu.vector_store %arg8[%c0_42, %c0_43], %63 {strides = array<i32>} : memref<8x128xf32, #tpu.memory_space<vmem>>, vector<8x128xf32>,
    %65 = math.tanh %60 : vector<8x128xf32>
    %66 = arith.mulf %57, %65 : vector<8x128xf32>
    %c0_44 = arith.constant 0 : index
    %c0_45 = arith.constant 0 : index
    %67 = vector.load %arg7[%c0_44, %c0_45] : memref<8x128xf32, #tpu.memory_space<vmem>>, vector<8x128xf32>
    tpu.vector_store %arg7[%c0_44, %c0_45], %66 {strides = array<i32>} : memref<8x128xf32, #tpu.memory_space<vmem>>, vector<8x128xf32>,
    %c0_46 = arith.constant 0 : index
    %c0_47 = arith.constant 0 : index
    %68 = vector.load %arg7[%c0_46, %c0_47] : memref<8x128xf32, #tpu.memory_space<vmem>>, vector<8x128xf32>
    %c0_48 = arith.constant 0 : index
    %c2 = arith.constant 2 : index
    %c0_49 = arith.constant 0 : index
    %69 = vector.load %arg5[%c0_48, %c2, %c0_49] : memref<8x8x128xf32, #tpu.memory_space<vmem>>, vector<8x1x128xf32>
    %70 = vector.shape_cast %69 : vector<8x1x128xf32> to vector<8x128xf32>
    %71 = vector.shape_cast %68 : vector<8x128xf32> to vector<8x1x128xf32>
    tpu.vector_store %arg5[%c0_48, %c2, %c0_49], %71 {strides = array<i32>} : memref<8x8x128xf32, #tpu.memory_space<vmem>>, vector<8x1x128xf32>,
    %c16 = arith.constant 16 : index
    %c0_50 = arith.constant 0 : index
    %72 = vector.load %arg6[%c16, %c0_50] : memref<64x512xf32, #tpu.memory_space<vmem>>, vector<8x512xf32>
    %c0_51 = arith.constant 0 : index
    %c0_52 = arith.constant 0 : index
    %73 = vector.load %arg3[%c0_51, %c0_52] : memref<128x512xf32, #tpu.memory_space<vmem>>, vector<128x512xf32>
    %cst_53 = arith.constant dense<0.000000e+00> : vector<8x512xf32>
    %74 = tpu.matmul %68, %73, %cst_53 {dimension_numbers = #tpu.dot_dimension_numbers<[1], [0], [0], [1], [0, 0, 1, 1], [], []>} : vector<8x128xf32>, vector<128x512xf32>, vector<8x512xf32> -> vector<8x512xf32>
    %75 = arith.addf %72, %74 : vector<8x512xf32>
    %76 = math.tanh %75 : vector<8x512xf32>
    %77 = vector.extract_strided_slice %76 {offsets = [0, 0], sizes = [8, 384], strides = [1, 1]} : vector<8x512xf32> to vector<8x384xf32>
    %78 = arith.negf %77 : vector<8x384xf32>
    %79 = math.exp %78 : vector<8x384xf32>
    %cst_54 = arith.constant 1.000000e+00 : f32
    %80 = vector.broadcast %cst_54 : f32 to vector<8x384xf32>
    %81 = arith.addf %80, %79 : vector<8x384xf32>
    %82 = arith.divf %80, %81 : vector<8x384xf32>
    %83 = vector.extract_strided_slice %82 {offsets = [0, 0], sizes = [8, 128], strides = [1, 1]} : vector<8x384xf32> to vector<8x128xf32>
    %84 = vector.extract_strided_slice %82 {offsets = [0, 128], sizes = [8, 128], strides = [1, 1]} : vector<8x384xf32> to vector<8x128xf32>
    %85 = vector.extract_strided_slice %82 {offsets = [0, 256], sizes = [8, 128], strides = [1, 1]} : vector<8x384xf32> to vector<8x128xf32>
    %86 = vector.extract_strided_slice %76 {offsets = [0, 384], sizes = [8, 128], strides = [1, 1]} : vector<8x512xf32> to vector<8x128xf32>
    %87 = math.tanh %86 : vector<8x128xf32>
    %c0_55 = arith.constant 0 : index
    %c0_56 = arith.constant 0 : index
    %88 = vector.load %arg8[%c0_55, %c0_56] : memref<8x128xf32, #tpu.memory_space<vmem>>, vector<8x128xf32>
    %89 = arith.mulf %83, %88 : vector<8x128xf32>
    %90 = arith.mulf %87, %84 : vector<8x128xf32>
    %91 = arith.addf %89, %90 : vector<8x128xf32>
    %c0_57 = arith.constant 0 : index
    %c0_58 = arith.constant 0 : index
    %92 = vector.load %arg8[%c0_57, %c0_58] : memref<8x128xf32, #tpu.memory_space<vmem>>, vector<8x128xf32>
    tpu.vector_store %arg8[%c0_57, %c0_58], %91 {strides = array<i32>} : memref<8x128xf32, #tpu.memory_space<vmem>>, vector<8x128xf32>,
    %93 = math.tanh %88 : vector<8x128xf32>
    %94 = arith.mulf %85, %93 : vector<8x128xf32>
    %c0_59 = arith.constant 0 : index
    %c0_60 = arith.constant 0 : index
    %95 = vector.load %arg7[%c0_59, %c0_60] : memref<8x128xf32, #tpu.memory_space<vmem>>, vector<8x128xf32>
    tpu.vector_store %arg7[%c0_59, %c0_60], %94 {strides = array<i32>} : memref<8x128xf32, #tpu.memory_space<vmem>>, vector<8x128xf32>,
    %c0_61 = arith.constant 0 : index
    %c0_62 = arith.constant 0 : index
    %96 = vector.load %arg7[%c0_61, %c0_62] : memref<8x128xf32, #tpu.memory_space<vmem>>, vector<8x128xf32>
    %c0_63 = arith.constant 0 : index
    %c3 = arith.constant 3 : index
    %c0_64 = arith.constant 0 : index
    %97 = vector.load %arg5[%c0_63, %c3, %c0_64] : memref<8x8x128xf32, #tpu.memory_space<vmem>>, vector<8x1x128xf32>
    %98 = vector.shape_cast %97 : vector<8x1x128xf32> to vector<8x128xf32>
    %99 = vector.shape_cast %96 : vector<8x128xf32> to vector<8x1x128xf32>
    tpu.vector_store %arg5[%c0_63, %c3, %c0_64], %99 {strides = array<i32>} : memref<8x8x128xf32, #tpu.memory_space<vmem>>, vector<8x1x128xf32>,
    %c24 = arith.constant 24 : index
    %c0_65 = arith.constant 0 : index
    %100 = vector.load %arg6[%c24, %c0_65] : memref<64x512xf32, #tpu.memory_space<vmem>>, vector<8x512xf32>
    %c0_66 = arith.constant 0 : index
    %c0_67 = arith.constant 0 : index
    %101 = vector.load %arg3[%c0_66, %c0_67] : memref<128x512xf32, #tpu.memory_space<vmem>>, vector<128x512xf32>
    %cst_68 = arith.constant dense<0.000000e+00> : vector<8x512xf32>
    %102 = tpu.matmul %96, %101, %cst_68 {dimension_numbers = #tpu.dot_dimension_numbers<[1], [0], [0], [1], [0, 0, 1, 1], [], []>} : vector<8x128xf32>, vector<128x512xf32>, vector<8x512xf32> -> vector<8x512xf32>
    %103 = arith.addf %100, %102 : vector<8x512xf32>
    %104 = math.tanh %103 : vector<8x512xf32>
    %105 = vector.extract_strided_slice %104 {offsets = [0, 0], sizes = [8, 384], strides = [1, 1]} : vector<8x512xf32> to vector<8x384xf32>
    %106 = arith.negf %105 : vector<8x384xf32>
    %107 = math.exp %106 : vector<8x384xf32>
    %cst_69 = arith.constant 1.000000e+00 : f32
    %108 = vector.broadcast %cst_69 : f32 to vector<8x384xf32>
    %109 = arith.addf %108, %107 : vector<8x384xf32>
    %110 = arith.divf %108, %109 : vector<8x384xf32>
    %111 = vector.extract_strided_slice %110 {offsets = [0, 0], sizes = [8, 128], strides = [1, 1]} : vector<8x384xf32> to vector<8x128xf32>
    %112 = vector.extract_strided_slice %110 {offsets = [0, 128], sizes = [8, 128], strides = [1, 1]} : vector<8x384xf32> to vector<8x128xf32>
    %113 = vector.extract_strided_slice %110 {offsets = [0, 256], sizes = [8, 128], strides = [1, 1]} : vector<8x384xf32> to vector<8x128xf32>
    %114 = vector.extract_strided_slice %104 {offsets = [0, 384], sizes = [8, 128], strides = [1, 1]} : vector<8x512xf32> to vector<8x128xf32>
    %115 = math.tanh %114 : vector<8x128xf32>
    %c0_70 = arith.constant 0 : index
    %c0_71 = arith.constant 0 : index
    %116 = vector.load %arg8[%c0_70, %c0_71] : memref<8x128xf32, #tpu.memory_space<vmem>>, vector<8x128xf32>
    %117 = arith.mulf %111, %116 : vector<8x128xf32>
    %118 = arith.mulf %115, %112 : vector<8x128xf32>
    %119 = arith.addf %117, %118 : vector<8x128xf32>
    %c0_72 = arith.constant 0 : index
    %c0_73 = arith.constant 0 : index
    %120 = vector.load %arg8[%c0_72, %c0_73] : memref<8x128xf32, #tpu.memory_space<vmem>>, vector<8x128xf32>
    tpu.vector_store %arg8[%c0_72, %c0_73], %119 {strides = array<i32>} : memref<8x128xf32, #tpu.memory_space<vmem>>, vector<8x128xf32>,
    %121 = math.tanh %116 : vector<8x128xf32>
    %122 = arith.mulf %113, %121 : vector<8x128xf32>
    %c0_74 = arith.constant 0 : index
    %c0_75 = arith.constant 0 : index
    %123 = vector.load %arg7[%c0_74, %c0_75] : memref<8x128xf32, #tpu.memory_space<vmem>>, vector<8x128xf32>
    tpu.vector_store %arg7[%c0_74, %c0_75], %122 {strides = array<i32>} : memref<8x128xf32, #tpu.memory_space<vmem>>, vector<8x128xf32>,
    %c0_76 = arith.constant 0 : index
    %c0_77 = arith.constant 0 : index
    %124 = vector.load %arg7[%c0_76, %c0_77] : memref<8x128xf32, #tpu.memory_space<vmem>>, vector<8x128xf32>
    %c0_78 = arith.constant 0 : index
    %c4 = arith.constant 4 : index
    %c0_79 = arith.constant 0 : index
    %125 = vector.load %arg5[%c0_78, %c4, %c0_79] : memref<8x8x128xf32, #tpu.memory_space<vmem>>, vector<8x1x128xf32>
    %126 = vector.shape_cast %125 : vector<8x1x128xf32> to vector<8x128xf32>
    %127 = vector.shape_cast %124 : vector<8x128xf32> to vector<8x1x128xf32>
    tpu.vector_store %arg5[%c0_78, %c4, %c0_79], %127 {strides = array<i32>} : memref<8x8x128xf32, #tpu.memory_space<vmem>>, vector<8x1x128xf32>,
    %c32 = arith.constant 32 : index
    %c0_80 = arith.constant 0 : index
    %128 = vector.load %arg6[%c32, %c0_80] : memref<64x512xf32, #tpu.memory_space<vmem>>, vector<8x512xf32>
    %c0_81 = arith.constant 0 : index
    %c0_82 = arith.constant 0 : index
    %129 = vector.load %arg3[%c0_81, %c0_82] : memref<128x512xf32, #tpu.memory_space<vmem>>, vector<128x512xf32>
    %cst_83 = arith.constant dense<0.000000e+00> : vector<8x512xf32>
    %130 = tpu.matmul %124, %129, %cst_83 {dimension_numbers = #tpu.dot_dimension_numbers<[1], [0], [0], [1], [0, 0, 1, 1], [], []>} : vector<8x128xf32>, vector<128x512xf32>, vector<8x512xf32> -> vector<8x512xf32>
    %131 = arith.addf %128, %130 : vector<8x512xf32>
    %132 = math.tanh %131 : vector<8x512xf32>
    %133 = vector.extract_strided_slice %132 {offsets = [0, 0], sizes = [8, 384], strides = [1, 1]} : vector<8x512xf32> to vector<8x384xf32>
    %134 = arith.negf %133 : vector<8x384xf32>
    %135 = math.exp %134 : vector<8x384xf32>
    %cst_84 = arith.constant 1.000000e+00 : f32
    %136 = vector.broadcast %cst_84 : f32 to vector<8x384xf32>
    %137 = arith.addf %136, %135 : vector<8x384xf32>
    %138 = arith.divf %136, %137 : vector<8x384xf32>
    %139 = vector.extract_strided_slice %138 {offsets = [0, 0], sizes = [8, 128], strides = [1, 1]} : vector<8x384xf32> to vector<8x128xf32>
    %140 = vector.extract_strided_slice %138 {offsets = [0, 128], sizes = [8, 128], strides = [1, 1]} : vector<8x384xf32> to vector<8x128xf32>
    %141 = vector.extract_strided_slice %138 {offsets = [0, 256], sizes = [8, 128], strides = [1, 1]} : vector<8x384xf32> to vector<8x128xf32>
    %142 = vector.extract_strided_slice %132 {offsets = [0, 384], sizes = [8, 128], strides = [1, 1]} : vector<8x512xf32> to vector<8x128xf32>
    %143 = math.tanh %142 : vector<8x128xf32>
    %c0_85 = arith.constant 0 : index
    %c0_86 = arith.constant 0 : index
    %144 = vector.load %arg8[%c0_85, %c0_86] : memref<8x128xf32, #tpu.memory_space<vmem>>, vector<8x128xf32>
    %145 = arith.mulf %139, %144 : vector<8x128xf32>
    %146 = arith.mulf %143, %140 : vector<8x128xf32>
    %147 = arith.addf %145, %146 : vector<8x128xf32>
    %c0_87 = arith.constant 0 : index
    %c0_88 = arith.constant 0 : index
    %148 = vector.load %arg8[%c0_87, %c0_88] : memref<8x128xf32, #tpu.memory_space<vmem>>, vector<8x128xf32>
    tpu.vector_store %arg8[%c0_87, %c0_88], %147 {strides = array<i32>} : memref<8x128xf32, #tpu.memory_space<vmem>>, vector<8x128xf32>,
    %149 = math.tanh %144 : vector<8x128xf32>
    %150 = arith.mulf %141, %149 : vector<8x128xf32>
    %c0_89 = arith.constant 0 : index
    %c0_90 = arith.constant 0 : index
    %151 = vector.load %arg7[%c0_89, %c0_90] : memref<8x128xf32, #tpu.memory_space<vmem>>, vector<8x128xf32>
    tpu.vector_store %arg7[%c0_89, %c0_90], %150 {strides = array<i32>} : memref<8x128xf32, #tpu.memory_space<vmem>>, vector<8x128xf32>,
    %c0_91 = arith.constant 0 : index
    %c0_92 = arith.constant 0 : index
    %152 = vector.load %arg7[%c0_91, %c0_92] : memref<8x128xf32, #tpu.memory_space<vmem>>, vector<8x128xf32>
    %c0_93 = arith.constant 0 : index
    %c5 = arith.constant 5 : index
    %c0_94 = arith.constant 0 : index
    %153 = vector.load %arg5[%c0_93, %c5, %c0_94] : memref<8x8x128xf32, #tpu.memory_space<vmem>>, vector<8x1x128xf32>
    %154 = vector.shape_cast %153 : vector<8x1x128xf32> to vector<8x128xf32>
    %155 = vector.shape_cast %152 : vector<8x128xf32> to vector<8x1x128xf32>
    tpu.vector_store %arg5[%c0_93, %c5, %c0_94], %155 {strides = array<i32>} : memref<8x8x128xf32, #tpu.memory_space<vmem>>, vector<8x1x128xf32>,
    %c40 = arith.constant 40 : index
    %c0_95 = arith.constant 0 : index
    %156 = vector.load %arg6[%c40, %c0_95] : memref<64x512xf32, #tpu.memory_space<vmem>>, vector<8x512xf32>
    %c0_96 = arith.constant 0 : index
    %c0_97 = arith.constant 0 : index
    %157 = vector.load %arg3[%c0_96, %c0_97] : memref<128x512xf32, #tpu.memory_space<vmem>>, vector<128x512xf32>
    %cst_98 = arith.constant dense<0.000000e+00> : vector<8x512xf32>
    %158 = tpu.matmul %152, %157, %cst_98 {dimension_numbers = #tpu.dot_dimension_numbers<[1], [0], [0], [1], [0, 0, 1, 1], [], []>} : vector<8x128xf32>, vector<128x512xf32>, vector<8x512xf32> -> vector<8x512xf32>
    %159 = arith.addf %156, %158 : vector<8x512xf32>
    %160 = math.tanh %159 : vector<8x512xf32>
    %161 = vector.extract_strided_slice %160 {offsets = [0, 0], sizes = [8, 384], strides = [1, 1]} : vector<8x512xf32> to vector<8x384xf32>
    %162 = arith.negf %161 : vector<8x384xf32>
    %163 = math.exp %162 : vector<8x384xf32>
    %cst_99 = arith.constant 1.000000e+00 : f32
    %164 = vector.broadcast %cst_99 : f32 to vector<8x384xf32>
    %165 = arith.addf %164, %163 : vector<8x384xf32>
    %166 = arith.divf %164, %165 : vector<8x384xf32>
    %167 = vector.extract_strided_slice %166 {offsets = [0, 0], sizes = [8, 128], strides = [1, 1]} : vector<8x384xf32> to vector<8x128xf32>
    %168 = vector.extract_strided_slice %166 {offsets = [0, 128], sizes = [8, 128], strides = [1, 1]} : vector<8x384xf32> to vector<8x128xf32>
    %169 = vector.extract_strided_slice %166 {offsets = [0, 256], sizes = [8, 128], strides = [1, 1]} : vector<8x384xf32> to vector<8x128xf32>
    %170 = vector.extract_strided_slice %160 {offsets = [0, 384], sizes = [8, 128], strides = [1, 1]} : vector<8x512xf32> to vector<8x128xf32>
    %171 = math.tanh %170 : vector<8x128xf32>
    %c0_100 = arith.constant 0 : index
    %c0_101 = arith.constant 0 : index
    %172 = vector.load %arg8[%c0_100, %c0_101] : memref<8x128xf32, #tpu.memory_space<vmem>>, vector<8x128xf32>
    %173 = arith.mulf %167, %172 : vector<8x128xf32>
    %174 = arith.mulf %171, %168 : vector<8x128xf32>
    %175 = arith.addf %173, %174 : vector<8x128xf32>
    %c0_102 = arith.constant 0 : index
    %c0_103 = arith.constant 0 : index
    %176 = vector.load %arg8[%c0_102, %c0_103] : memref<8x128xf32, #tpu.memory_space<vmem>>, vector<8x128xf32>
    tpu.vector_store %arg8[%c0_102, %c0_103], %175 {strides = array<i32>} : memref<8x128xf32, #tpu.memory_space<vmem>>, vector<8x128xf32>,
    %177 = math.tanh %172 : vector<8x128xf32>
    %178 = arith.mulf %169, %177 : vector<8x128xf32>
    %c0_104 = arith.constant 0 : index
    %c0_105 = arith.constant 0 : index
    %179 = vector.load %arg7[%c0_104, %c0_105] : memref<8x128xf32, #tpu.memory_space<vmem>>, vector<8x128xf32>
    tpu.vector_store %arg7[%c0_104, %c0_105], %178 {strides = array<i32>} : memref<8x128xf32, #tpu.memory_space<vmem>>, vector<8x128xf32>,
    %c0_106 = arith.constant 0 : index
    %c0_107 = arith.constant 0 : index
    %180 = vector.load %arg7[%c0_106, %c0_107] : memref<8x128xf32, #tpu.memory_space<vmem>>, vector<8x128xf32>
    %c0_108 = arith.constant 0 : index
    %c6 = arith.constant 6 : index
    %c0_109 = arith.constant 0 : index
    %181 = vector.load %arg5[%c0_108, %c6, %c0_109] : memref<8x8x128xf32, #tpu.memory_space<vmem>>, vector<8x1x128xf32>
    %182 = vector.shape_cast %181 : vector<8x1x128xf32> to vector<8x128xf32>
    %183 = vector.shape_cast %180 : vector<8x128xf32> to vector<8x1x128xf32>
    tpu.vector_store %arg5[%c0_108, %c6, %c0_109], %183 {strides = array<i32>} : memref<8x8x128xf32, #tpu.memory_space<vmem>>, vector<8x1x128xf32>,
    %c48 = arith.constant 48 : index
    %c0_110 = arith.constant 0 : index
    %184 = vector.load %arg6[%c48, %c0_110] : memref<64x512xf32, #tpu.memory_space<vmem>>, vector<8x512xf32>
    %c0_111 = arith.constant 0 : index
    %c0_112 = arith.constant 0 : index
    %185 = vector.load %arg3[%c0_111, %c0_112] : memref<128x512xf32, #tpu.memory_space<vmem>>, vector<128x512xf32>
    %cst_113 = arith.constant dense<0.000000e+00> : vector<8x512xf32>
    %186 = tpu.matmul %180, %185, %cst_113 {dimension_numbers = #tpu.dot_dimension_numbers<[1], [0], [0], [1], [0, 0, 1, 1], [], []>} : vector<8x128xf32>, vector<128x512xf32>, vector<8x512xf32> -> vector<8x512xf32>
    %187 = arith.addf %184, %186 : vector<8x512xf32>
    %188 = math.tanh %187 : vector<8x512xf32>
    %189 = vector.extract_strided_slice %188 {offsets = [0, 0], sizes = [8, 384], strides = [1, 1]} : vector<8x512xf32> to vector<8x384xf32>
    %190 = arith.negf %189 : vector<8x384xf32>
    %191 = math.exp %190 : vector<8x384xf32>
    %cst_114 = arith.constant 1.000000e+00 : f32
    %192 = vector.broadcast %cst_114 : f32 to vector<8x384xf32>
    %193 = arith.addf %192, %191 : vector<8x384xf32>
    %194 = arith.divf %192, %193 : vector<8x384xf32>
    %195 = vector.extract_strided_slice %194 {offsets = [0, 0], sizes = [8, 128], strides = [1, 1]} : vector<8x384xf32> to vector<8x128xf32>
    %196 = vector.extract_strided_slice %194 {offsets = [0, 128], sizes = [8, 128], strides = [1, 1]} : vector<8x384xf32> to vector<8x128xf32>
    %197 = vector.extract_strided_slice %194 {offsets = [0, 256], sizes = [8, 128], strides = [1, 1]} : vector<8x384xf32> to vector<8x128xf32>
    %198 = vector.extract_strided_slice %188 {offsets = [0, 384], sizes = [8, 128], strides = [1, 1]} : vector<8x512xf32> to vector<8x128xf32>
    %199 = math.tanh %198 : vector<8x128xf32>
    %c0_115 = arith.constant 0 : index
    %c0_116 = arith.constant 0 : index
    %200 = vector.load %arg8[%c0_115, %c0_116] : memref<8x128xf32, #tpu.memory_space<vmem>>, vector<8x128xf32>
    %201 = arith.mulf %195, %200 : vector<8x128xf32>
    %202 = arith.mulf %199, %196 : vector<8x128xf32>
    %203 = arith.addf %201, %202 : vector<8x128xf32>
    %c0_117 = arith.constant 0 : index
    %c0_118 = arith.constant 0 : index
    %204 = vector.load %arg8[%c0_117, %c0_118] : memref<8x128xf32, #tpu.memory_space<vmem>>, vector<8x128xf32>
    tpu.vector_store %arg8[%c0_117, %c0_118], %203 {strides = array<i32>} : memref<8x128xf32, #tpu.memory_space<vmem>>, vector<8x128xf32>,
    %205 = math.tanh %200 : vector<8x128xf32>
    %206 = arith.mulf %197, %205 : vector<8x128xf32>
    %c0_119 = arith.constant 0 : index
    %c0_120 = arith.constant 0 : index
    %207 = vector.load %arg7[%c0_119, %c0_120] : memref<8x128xf32, #tpu.memory_space<vmem>>, vector<8x128xf32>
    tpu.vector_store %arg7[%c0_119, %c0_120], %206 {strides = array<i32>} : memref<8x128xf32, #tpu.memory_space<vmem>>, vector<8x128xf32>,
    %c0_121 = arith.constant 0 : index
    %c0_122 = arith.constant 0 : index
    %208 = vector.load %arg7[%c0_121, %c0_122] : memref<8x128xf32, #tpu.memory_space<vmem>>, vector<8x128xf32>
    %c0_123 = arith.constant 0 : index
    %c7 = arith.constant 7 : index
    %c0_124 = arith.constant 0 : index
    %209 = vector.load %arg5[%c0_123, %c7, %c0_124] : memref<8x8x128xf32, #tpu.memory_space<vmem>>, vector<8x1x128xf32>
    %210 = vector.shape_cast %209 : vector<8x1x128xf32> to vector<8x128xf32>
    %211 = vector.shape_cast %208 : vector<8x128xf32> to vector<8x1x128xf32>
    tpu.vector_store %arg5[%c0_123, %c7, %c0_124], %211 {strides = array<i32>} : memref<8x8x128xf32, #tpu.memory_space<vmem>>, vector<8x1x128xf32>,
    %c56 = arith.constant 56 : index
    %c0_125 = arith.constant 0 : index
    %212 = vector.load %arg6[%c56, %c0_125] : memref<64x512xf32, #tpu.memory_space<vmem>>, vector<8x512xf32>
    %c0_126 = arith.constant 0 : index
    %c0_127 = arith.constant 0 : index
    %213 = vector.load %arg3[%c0_126, %c0_127] : memref<128x512xf32, #tpu.memory_space<vmem>>, vector<128x512xf32>
    %cst_128 = arith.constant dense<0.000000e+00> : vector<8x512xf32>
    %214 = tpu.matmul %208, %213, %cst_128 {dimension_numbers = #tpu.dot_dimension_numbers<[1], [0], [0], [1], [0, 0, 1, 1], [], []>} : vector<8x128xf32>, vector<128x512xf32>, vector<8x512xf32> -> vector<8x512xf32>
    %215 = arith.addf %212, %214 : vector<8x512xf32>
    %216 = math.tanh %215 : vector<8x512xf32>
    %217 = vector.extract_strided_slice %216 {offsets = [0, 0], sizes = [8, 384], strides = [1, 1]} : vector<8x512xf32> to vector<8x384xf32>
    %218 = arith.negf %217 : vector<8x384xf32>
    %219 = math.exp %218 : vector<8x384xf32>
    %cst_129 = arith.constant 1.000000e+00 : f32
    %220 = vector.broadcast %cst_129 : f32 to vector<8x384xf32>
    %221 = arith.addf %220, %219 : vector<8x384xf32>
    %222 = arith.divf %220, %221 : vector<8x384xf32>
    %223 = vector.extract_strided_slice %222 {offsets = [0, 0], sizes = [8, 128], strides = [1, 1]} : vector<8x384xf32> to vector<8x128xf32>
    %224 = vector.extract_strided_slice %222 {offsets = [0, 128], sizes = [8, 128], strides = [1, 1]} : vector<8x384xf32> to vector<8x128xf32>
    %225 = vector.extract_strided_slice %222 {offsets = [0, 256], sizes = [8, 128], strides = [1, 1]} : vector<8x384xf32> to vector<8x128xf32>
    %226 = vector.extract_strided_slice %216 {offsets = [0, 384], sizes = [8, 128], strides = [1, 1]} : vector<8x512xf32> to vector<8x128xf32>
    %227 = math.tanh %226 : vector<8x128xf32>
    %c0_130 = arith.constant 0 : index
    %c0_131 = arith.constant 0 : index
    %228 = vector.load %arg8[%c0_130, %c0_131] : memref<8x128xf32, #tpu.memory_space<vmem>>, vector<8x128xf32>
    %229 = arith.mulf %223, %228 : vector<8x128xf32>
    %230 = arith.mulf %227, %224 : vector<8x128xf32>
    %231 = arith.addf %229, %230 : vector<8x128xf32>
    %c0_132 = arith.constant 0 : index
    %c0_133 = arith.constant 0 : index
    %232 = vector.load %arg8[%c0_132, %c0_133] : memref<8x128xf32, #tpu.memory_space<vmem>>, vector<8x128xf32>
    tpu.vector_store %arg8[%c0_132, %c0_133], %231 {strides = array<i32>} : memref<8x128xf32, #tpu.memory_space<vmem>>, vector<8x128xf32>,
    %233 = math.tanh %228 : vector<8x128xf32>
    %234 = arith.mulf %225, %233 : vector<8x128xf32>
    %c0_134 = arith.constant 0 : index
    %c0_135 = arith.constant 0 : index
    %235 = vector.load %arg7[%c0_134, %c0_135] : memref<8x128xf32, #tpu.memory_space<vmem>>, vector<8x128xf32>
    tpu.vector_store %arg7[%c0_134, %c0_135], %234 {strides = array<i32>} : memref<8x128xf32, #tpu.memory_space<vmem>>, vector<8x128xf32>,
    return
  }
  func.func @transform_0(%arg0: i32) -> (i32, i32, i32) {
    %c0_i32 = arith.constant 0 : i32
    %c0_i32_0 = arith.constant 0 : i32
    %c0_i32_1 = arith.constant 0 : i32
    return %c0_i32, %arg0, %c0_i32_0 : i32, i32, i32
  }
  func.func @transform_1(%arg0: i32) -> (i32, i32) {
    %c0_i32 = arith.constant 0 : i32
    %c0_i32_0 = arith.constant 0 : i32
    %c0_i32_1 = arith.constant 0 : i32
    return %c0_i32, %c0_i32_0 : i32, i32
  }
  func.func @transform_2(%arg0: i32) -> (i32, i32) {
    %c0_i32 = arith.constant 0 : i32
    %c0_i32_0 = arith.constant 0 : i32
    %c0_i32_1 = arith.constant 0 : i32
    return %c0_i32, %c0_i32_0 : i32, i32
  }
  func.func @transform_3(%arg0: i32) -> (i32, i32) {
    %c0_i32 = arith.constant 0 : i32
    %c0_i32_0 = arith.constant 0 : i32
    %c0_i32_1 = arith.constant 0 : i32
    return %c0_i32, %c0_i32_0 : i32, i32
  }
  func.func @transform_4(%arg0: i32) -> (i32, i32, i32) {
    %c0_i32 = arith.constant 0 : i32
    %c0_i32_0 = arith.constant 0 : i32
    %c0_i32_1 = arith.constant 0 : i32
    return %arg0, %c0_i32, %c0_i32_0 : i32, i32, i32
  }
}

</mosaic_0001>

<bundles_post_ra>
// kernel: tpu_custom_call.1
= control target key start
LH: loop header
LB: loop body
LE: loop exit
PB: predicated region body
PF: predicated region fallthrough
CT: control target
= control target key end

     0   :  { %9 = vsyncpa [#allocation6], 0  ;;  %s3869_s0 = inlined_call_operand.hbm [shape: f32[8,8,16], index: 0, kind: input, shape index: {}]   ;;  %s3870_s1 = inlined_call_operand.hbm [shape: f32[16,512], index: 1, kind: input, shape index: {}]   ;;  %s3871_s2 = inlined_call_operand.hbm [shape: f32[128,512], index: 2, kind: input, shape index: {}]   ;;  %s3872_s3 = inlined_call_operand.hbm [shape: f32[1,512], index: 3, kind: input, shape index: {}]   ;;  %s3873_s4 = inlined_call_operand.hbm [shape: f32[8,8,128], index: 4, kind: output, shape index: {}]  }
   0x1   :  { %10 = vsyncpa [#allocation9], 0 }
   0x2   :  { %11 = vsyncpa [#allocation12], 0  ;;  %s30_s17 = sshll.u32 %s3870_s1, 4  ;;  %s31_s17 = int_to_ptr.hbm [resolvable:$true] %s30_s17 }
   0x3   :  { %12 = vsyncpa [#allocation7], 0  ;;  %s2663_s18 = smov [#allocation8]   ;;  %s17_s22 = sshll.u32 %s3869_s0, 4  ;;  %s18_s22 = int_to_ptr.hbm [resolvable:$true] %s17_s22 }
   0x4   :  { %s32_s19 = sshll.u32 %s2663_s18, 4  ;;  %s2664_s23 = smov 512   ;;  %s33_s19 = int_to_ptr.vmem [resolvable:$true] %s32_s19 }
   0x5   :  { %s2665_s24 = smov 32   ;;  %s2666_s25 = smov [#allocation5]  }
   0x6   :  { %38 = dma.hbm_to_vmem [thread:$0]  %s31_s17, 1024, %s33_s19, [#allocation9], %s2664_s23, %s2664_s23, %s2665_s24  }
   0x7   :  { %s19_s26 = sshll.u32 %s2666_s25, 4  ;;  %s2667_s27 = smov 128   ;;  %s20_s26 = int_to_ptr.vmem [resolvable:$true] %s19_s26 }
   0x8   :  { %s2668_s28 = smov 8   ;;  %s43_s30 = sshll.u32 %s3871_s2, 4  ;;  %s44_s30 = int_to_ptr.hbm [resolvable:$true] %s43_s30 }
   0x9   :  { %25 = dma.hbm_to_vmem [thread:$0]  %s18_s22, 1024, %s20_s26, [#allocation6], %s2667_s27, %s2667_s27, %s2668_s28  }
   0xa   :  { %s2669_s5 = smov [#allocation10]   ;;  %s57_s8 = sshll.u32 %s3872_s3, 4  ;;  %s58_s8 = int_to_ptr.hbm [resolvable:$true] %s57_s8 }
   0xb   :  { %s45_s0 = sshll.u32 %s2669_s5, 4  ;;  %s2670_s9 = smov [#allocation11]   ;;  %s46_s0 = int_to_ptr.vmem [resolvable:$true] %s45_s0 }
   0xc   :  { %51 = dma.hbm_to_vmem [thread:$0]  %s44_s30, 8192, %s46_s0, [#allocation9], %s2664_s23, %s2664_s23, %s2665_s24  }
   0xd   :  { %s59_s10 = sshll.u32 %s2670_s9, 4  ;;  %s60_s10 = int_to_ptr.vmem [resolvable:$true] %s59_s10 }
   0xe   :  { %62 = dma.hbm_to_vmem [thread:$0]  %s58_s8, 64, %s60_s10, [#allocation12]  }
   0xf   :  { %2655 = dma.done.wait [#allocation6], 1024  }
  0x10   :  { %2656 = vsyncadd [#allocation6], 4294966272 }
  0x11   :  { %2657 = dma.done.wait [#allocation9], 9216  }
  0x12   :  { %2658 = vsyncadd [#allocation9], 4294958080 }
  0x13   :  { %2659 = dma.done.wait [#allocation12], 64  }
  0x14   :  { %2660 = vsyncadd [#allocation12], 4294967232  ;;  %v93_v0 = vld [vmem:[#allocation8 + $0x30] sm:$0xff]  ;;  %v2713_v2 = vld [vmem:[#allocation5] sm:$0xff]  ;;  %vm105_vm0 = vcmask 130048   ;;  %v2671_v20 = vmov 0.0  }
  0x15   :  { %v89_v1 = vld [vmem:[#allocation8 + $0x10] sm:$0xff]  ;;  %226 = vmatpush.msra.mxu2 %v93_v0  ;;  %v2727_v7 = vld [vmem:[#allocation5 + $0x8] sm:$0xff]  ;;  %v2759_v17 = vld [vmem:[#allocation5 + $0x18] sm:$0xff]  ;;  %v330_v21 = vrot.slane %v2671_v20, 1  ;;  %v331_v22 = vrot.slane %v2671_v20, 2  ;;  %v332_v23 = vrot.slane %v2671_v20, 3 }
  0x16   :  { %v2715_v3 = vld [vmem:[#allocation10 + $0x1f0] sm:$0xff]  ;;  %344 = vst [vmem:[#allocation13] sm:$0x1] %v2671_v20  ;;  %v333_v25 = vrot.slane %v2671_v20, 4  ;;  %v334_v26 = vrot.slane %v2671_v20, 5  ;;  %v335_v28 = vrot.slane %v2671_v20, 6 }
  0x17   :  { %227 = vmatpush.msra.mxu2 %v89_v1  ;;  %v2719_v4 = vld [vmem:[#allocation10 + $0x1d0] sm:$0xff]  ;;  %345 = vst [vmem:[#allocation13 + $0x8] sm:$0x1] %v330_v21  ;;  %v2782_v29 = vld [vmem:[#allocation5 + $0x20] sm:$0xff]  ;;  %v336_v30 = vrot.slane %v2671_v20, 7  ;;  %v92_v32 = vld [vmem:[#allocation8 + $0x28] sm:$0xff] }
  0x18   :  { %2333 = vmatmul.msk.f32.vlgmr.msra.gmra.mxu2 %vm105_vm0, %v2713_v2  ;;  %v2722_v5 = vld [vmem:[#allocation10 + $0x1b0] sm:$0xff]  ;;  %346 = vst [vmem:[#allocation13 + $0x10] sm:$0x1] %v331_v22  ;;  %v91_v31 = vld [vmem:[#allocation8 + $0x20] sm:$0xff]  ;;  %185 = vmatpush.msra.mxu1 %v92_v32  ;;  %v88_v34 = vld [vmem:[#allocation8 + $0x8] sm:$0xff]  ;;  %s2302_s11 = sshll.u32 %s3873_s4, 4  ;;  %s2303_s11 = int_to_ptr.hbm [resolvable:$true] %s2302_s11 }
  0x19   :  { %460 = vmatpush.msrb.mxu2 %v2715_v3  ;;  %v2725_v6 = vld [vmem:[#allocation10 + $0x190] sm:$0xff]  ;;  %347 = vst [vmem:[#allocation13 + $0x18] sm:$0x1] %v332_v23  ;;  %v87_v33 = vld [vmem:[#allocation8] sm:$0xff]  ;;  %144 = vmatpush.msra.mxu0 %v91_v31  ;;  %v94_v35 = vld [vmem:[#allocation8 + $0x38] sm:$0xff]  ;;  %s2672_s12 = smov [#allocation13]  }
  0x1a   :  { %v2730_v8 = vld [vmem:[#allocation10 + $0x170] sm:$0xff]  ;;  %348 = vst [vmem:[#allocation13 + $0x20] sm:$0x1] %v333_v25  ;;  %267 = vmatpush.msra.mxu3 %v94_v35  ;;  %v90_v36 = vld [vmem:[#allocation8 + $0x18] sm:$0xff]  ;;  %186 = vmatpush.msra.mxu1 %v88_v34  ;;  %v2794_v37 = vld [vmem:[#allocation10 + $0x1e0] sm:$0xff]  ;;  %s2300_s13 = sshll.u32 %s2672_s12, 4  ;;  %s2301_s13 = int_to_ptr.vmem [resolvable:$true] %s2300_s13 }
  0x1b   :  { %461 = vmatpush.msrb.mxu2 %v2719_v4  ;;  %v2735_v9 = vld [vmem:[#allocation10 + $0x150] sm:$0xff]  ;;  %349 = vst [vmem:[#allocation13 + $0x28] sm:$0x1] %v334_v26  ;;  %145 = vmatpush.msra.mxu0 %v87_v33  ;;  %v2796_v38 = vld [vmem:[#allocation10 + $0x1e8] sm:$0xff]  ;;  %v2798_v39 = vld [vmem:[#allocation10 + $0x1c0] sm:$0xff] }
  0x1c   :  { %v2738_v10 = vld [vmem:[#allocation10 + $0x130] sm:$0xff]  ;;  %350 = vst [vmem:[#allocation13 + $0x30] sm:$0x1] %v335_v28  ;;  %2317 = vmatmul.msk.f32.vlgmr.msra.gmra.mxu0 %vm105_vm0, %v2713_v2  ;;  %2325 = vmatmul.msk.f32.vlgmr.msra.gmra.mxu1 %vm105_vm0, %v2713_v2  ;;  %v84_v40 = vld [vmem:[#allocation5 + $0x28] sm:$0xff]  ;;  %v2806_v42 = vld [vmem:[#allocation10 + $0x1a0] sm:$0xff] }
  0x1d   :  { %462 = vmatpush.msrb.mxu2 %v2722_v5  ;;  %v2741_v11 = vld [vmem:[#allocation10 + $0x110] sm:$0xff]  ;;  %351 = vst [vmem:[#allocation13 + $0x38] sm:$0x1] %v336_v30  ;;  %268 = vmatpush.msra.mxu3 %v90_v36  ;;  %v2801_v41 = vld [vmem:[#allocation10 + $0x1c8] sm:$0xff]  ;;  %v2814_v44 = vld [vmem:[#allocation10 + $0x180] sm:$0xff] }
  0x1e   :  { %v2743_v12 = vld [vmem:[#allocation5 + $0x10] sm:$0xff]  ;;  %420 = vmatpush.msrb.mxu0 %v2794_v37  ;;  %2341 = vmatmul.msk.f32.vlgmr.msra.gmra.mxu3 %vm105_vm0, %v2713_v2  ;;  %v2809_v43 = vld [vmem:[#allocation10 + $0x1a8] sm:$0xff]  ;;  %v86_v47 = vld [vmem:[#allocation5 + $0x38] sm:$0xff] }
  0x1f   :  { %463 = vmatpush.msrb.mxu2 %v2725_v6  ;;  %v2746_v13 = vld [vmem:[#allocation10 + $0xf0] sm:$0xff]  ;;  %440 = vmatpush.msrb.mxu1 %v2796_v38  ;;  %v2819_v45 = vld [vmem:[#allocation10 + $0x188] sm:$0xff]  ;;  %v2872_v48 = vld [vmem:[#allocation10 + $0x160] sm:$0xff] }
  0x20   :  { %2334 = vmatmul.msk.f32.gmra.mxu2 %vm105_vm0, %v2727_v7  ;;  %v2751_v14 = vld [vmem:[#allocation10 + $0xd0] sm:$0xff]  ;;  %421 = vmatpush.msrb.mxu0 %v2798_v39  ;;  %v2874_v49 = vld [vmem:[#allocation10 + $0x168] sm:$0xff]  ;;  %v2878_v50 = vld [vmem:[#allocation10 + $0x140] sm:$0xff] }
  0x21   :  { %464 = vmatpush.msrb.mxu2 %v2730_v8  ;;  %v2754_v15 = vld [vmem:[#allocation10 + $0xb0] sm:$0xff]  ;;  %441 = vmatpush.msrb.mxu1 %v2801_v41  ;;  %v2880_v51 = vld [vmem:[#allocation10 + $0x148] sm:$0xff]  ;;  %v2882_v52 = vld [vmem:[#allocation10 + $0x120] sm:$0xff] }
  0x22   :  { %v2757_v16 = vld [vmem:[#allocation10 + $0x90] sm:$0xff]  ;;  %422 = vmatpush.msrb.mxu0 %v2806_v42  ;;  %v2884_v53 = vld [vmem:[#allocation10 + $0x128] sm:$0xff]  ;;  %v2888_v54 = vld [vmem:[#allocation10 + $0x100] sm:$0xff] }
  0x23   :  { %465 = vmatpush.msrb.mxu2 %v2735_v9  ;;  %v2762_v18 = vld [vmem:[#allocation10 + $0x70] sm:$0xff]  ;;  %442 = vmatpush.msrb.mxu1 %v2809_v43  ;;  %v2890_v55 = vld [vmem:[#allocation10 + $0x108] sm:$0xff]  ;;  %v2896_v56 = vld [vmem:[#allocation10 + $0x1f8] sm:$0xff] }
  0x24   :  { %v2767_v19 = vld [vmem:[#allocation10 + $0x50] sm:$0xff]  ;;  %423 = vmatpush.msrb.mxu0 %v2814_v44  ;;  %2326 = vmatmul.msk.f32.gmra.mxu1 %vm105_vm0, %v2727_v7  ;;  %v2899_v57 = vld [vmem:[#allocation10 + $0xe0] sm:$0xff]  ;;  %v2901_v58 = vld [vmem:[#allocation10 + $0xe8] sm:$0xff] }
  0x25   :  { %466 = vmatpush.msrb.mxu2 %v2738_v10  ;;  %v2774_v24 = vld [vmem:[#allocation10 + $0x30] sm:$0xff]  ;;  %2318 = vmatmul.msk.f32.gmra.mxu0 %vm105_vm0, %v2727_v7  ;;  %v2905_v59 = vld [vmem:[#allocation10 + $0x1d8] sm:$0xff]  ;;  %v2907_v60 = vld [vmem:[#allocation10 + $0xc0] sm:$0xff] }
  0x26   :  { %v2779_v27 = vld [vmem:[#allocation10 + $0x10] sm:$0xff]  ;;  %443 = vmatpush.msrb.mxu1 %v2819_v45  ;;  %2342 = vmatmul.msk.f32.gmra.mxu3 %vm105_vm0, %v2727_v7  ;;  %v2909_v61 = vld [vmem:[#allocation10 + $0xc8] sm:$0xff]  ;;  %v2912_v62 = vld [vmem:[#allocation10 + $0x1b8] sm:$0xff] }
  0x27   :  { %467 = vmatpush.msrb.mxu2 %v2741_v11  ;;  %v85_v46 = vld [vmem:[#allocation5 + $0x30] sm:$0xff]  ;;  %424 = vmatpush.msrb.mxu0 %v2872_v48  ;;  %v2914_v63 = vld [vmem:[#allocation10 + $0xa0] sm:$0xff]  ;;  %v2916_v0 = vld [vmem:[#allocation10 + $0xa8] sm:$0xff] }
  0x28   :  { %2335 = vmatmul.msk.f32.gmra.mxu2 %vm105_vm0, %v2743_v12  ;;  %444 = vmatpush.msrb.mxu1 %v2874_v49  ;;  %v2920_v1 = vld [vmem:[#allocation10 + $0x198] sm:$0xff]  ;;  %v2923_v2 = vld [vmem:[#allocation10 + $0x80] sm:$0xff] }
  0x29   :  { %468 = vmatpush.msrb.mxu2 %v2746_v13  ;;  %425 = vmatpush.msrb.mxu0 %v2878_v50  ;;  %v2941_v7 = vld [vmem:[#allocation10 + $0x158] sm:$0xff]  ;;  %v3003_v25 = vld [vmem:[#allocation11] sm:$0xf] }
  0x2a   :  { %445 = vmatpush.msrb.mxu1 %v2880_v51  ;;  %480 = vmatpush.msrb.mxu3 %v2896_v56  ;;  %v2988_v21 = vld [vmem:[#allocation10 + $0x78] sm:$0xff] }
  0x2b   :  { %469 = vmatpush.msrb.mxu2 %v2751_v14  ;;  %426 = vmatpush.msrb.mxu0 %v2882_v52  ;;  %v2995_v23 = vld [vmem:[#allocation10 + $0x58] sm:$0xff] }
  0x2c   :  { %2327 = vmatmul.msk.f32.gmra.mxu1 %vm105_vm0, %v2743_v12  ;;  %481 = vmatpush.msrb.mxu3 %v2905_v59  ;;  %v3005_v26 = vld [vmem:[#allocation10 + $0x18] sm:$0xff] }
  0x2d   :  { %470 = vmatpush.msrb.mxu2 %v2754_v15  ;;  %2319 = vmatmul.msk.f32.gmra.mxu0 %vm105_vm0, %v2743_v12 }
  0x2e   :  { %2343 = vmatmul.msk.f32.gmra.mxu3 %vm105_vm0, %v2743_v12  ;;  %446 = vmatpush.msrb.mxu1 %v2884_v53  ;;  %v2952_v12 = vld [vmem:[#allocation10 + $0x28] sm:$0xff] }
  0x2f   :  { %471 = vmatpush.msrb.mxu2 %v2757_v16  ;;  %427 = vmatpush.msrb.mxu0 %v2888_v54 }
  0x30   :  { %2336 = vmatmul.msk.f32.gmra.mxu2 %vm105_vm0, %v2759_v17  ;;  %447 = vmatpush.msrb.mxu1 %v2890_v55 }
  0x31   :  { %472 = vmatpush.msrb.mxu2 %v2762_v18  ;;  %428 = vmatpush.msrb.mxu0 %v2899_v57 }
  0x32   :  { %448 = vmatpush.msrb.mxu1 %v2901_v58  ;;  %482 = vmatpush.msrb.mxu3 %v2912_v62 }
  0x33   :  { %473 = vmatpush.msrb.mxu2 %v2767_v19  ;;  %429 = vmatpush.msrb.mxu0 %v2907_v60 }
  0x34   :  { %2328 = vmatmul.msk.f32.gmra.mxu1 %vm105_vm0, %v2759_v17  ;;  %483 = vmatpush.msrb.mxu3 %v2920_v1 }
  0x35   :  { %474 = vmatpush.msrb.mxu2 %v2774_v24  ;;  %2320 = vmatmul.msk.f32.gmra.mxu0 %vm105_vm0, %v2759_v17 }
  0x36   :  { %2344 = vmatmul.msk.f32.gmra.mxu3 %vm105_vm0, %v2759_v17  ;;  %449 = vmatpush.msrb.mxu1 %v2909_v61  ;;  %v2973_v17 = vld [vmem:[#allocation10 + $0xd8] sm:$0xff] }
  0x37   :  { %475 = vmatpush.msrb.mxu2 %v2779_v27  ;;  %430 = vmatpush.msrb.mxu0 %v2914_v63 }
  0x38   :  { %2337 = vmatmul.msk.f32.gmra.mxu2 %vm105_vm0, %v2782_v29  ;;  %450 = vmatpush.msrb.mxu1 %v2916_v0 }
  0x39   :  { %706 = vmatpush.msra.mxu2 %v2715_v3  ;;  %v2925_v3 = vld [vmem:[#allocation10 + $0x88] sm:$0xff]  ;;  %431 = vmatpush.msrb.mxu0 %v2923_v2 }
  0x3a   :  { %451 = vmatpush.msrb.mxu1 %v2925_v3 }
  0x3b   :  { %707 = vmatpush.msra.mxu2 %v2719_v4  ;;  %v2932_v4 = vld [vmem:[#allocation10 + $0x178] sm:$0xff] }
  0x3c   :  { %2329 = vmatmul.msk.f32.gmra.mxu1 %vm105_vm0, %v2782_v29  ;;  %484 = vmatpush.msrb.mxu3 %v2932_v4 }
  0x3d   :  { %708 = vmatpush.msra.mxu2 %v2722_v5  ;;  %2321 = vmatmul.msk.f32.gmra.mxu0 %vm105_vm0, %v2782_v29  ;;  %v2935_v5 = vld [vmem:[#allocation10 + $0x60] sm:$0xff] }
  0x3e   :  { %2345 = vmatmul.msk.f32.gmra.mxu3 %vm105_vm0, %v2782_v29  ;;  %432 = vmatpush.msrb.mxu0 %v2935_v5 }
  0x3f   :  { %709 = vmatpush.msra.mxu2 %v2725_v6  ;;  %v2937_v6 = vld [vmem:[#allocation10 + $0x68] sm:$0xff]  ;;  %485 = vmatpush.msrb.mxu3 %v2941_v7 }
  0x40   :  { %2338 = vmatmul.msk.f32.gmra.mxu2 %vm105_vm0, %v84_v40  ;;  %452 = vmatpush.msrb.mxu1 %v2937_v6 }
  0x41   :  { %710 = vmatpush.msra.mxu2 %v2730_v8  ;;  %v2943_v8 = vld [vmem:[#allocation10 + $0x40] sm:$0xff] }
  0x42   :  { %433 = vmatpush.msrb.mxu0 %v2943_v8 }
  0x43   :  { %711 = vmatpush.msra.mxu2 %v2735_v9  ;;  %v2945_v9 = vld [vmem:[#allocation10 + $0x48] sm:$0xff] }
  0x44   :  { %2330 = vmatmul.msk.f32.gmra.mxu1 %vm105_vm0, %v84_v40 }
  0x45   :  { %712 = vmatpush.msra.mxu2 %v2738_v10  ;;  %2322 = vmatmul.msk.f32.gmra.mxu0 %vm105_vm0, %v84_v40  ;;  %v2948_v10 = vld [vmem:[#allocation10 + $0x138] sm:$0xff] }
  0x46   :  { %2346 = vmatmul.msk.f32.gmra.mxu3 %vm105_vm0, %v84_v40  ;;  %453 = vmatpush.msrb.mxu1 %v2945_v9 }
  0x47   :  { %713 = vmatpush.msra.mxu2 %v2741_v11  ;;  %v2950_v11 = vld [vmem:[#allocation10 + $0x20] sm:$0xff]  ;;  %486 = vmatpush.msrb.mxu3 %v2948_v10 }
  0x48   :  { %2339 = vmatmul.msk.f32.gmra.mxu2 %vm105_vm0, %v85_v46  ;;  %434 = vmatpush.msrb.mxu0 %v2950_v11 }
  0x49   :  { %714 = vmatpush.msra.mxu2 %v2746_v13  ;;  %v2956_v13 = vld [vmem:[#allocation10 + $0x118] sm:$0xff]  ;;  %454 = vmatpush.msrb.mxu1 %v2952_v12 }
  0x4a   :  { %487 = vmatpush.msrb.mxu3 %v2956_v13 }
  0x4b   :  { %715 = vmatpush.msra.mxu2 %v2751_v14  ;;  %v2959_v14 = vld [vmem:[#allocation10] sm:$0xff] }
  0x4c   :  { %2331 = vmatmul.msk.f32.gmra.mxu1 %vm105_vm0, %v85_v46  ;;  %435 = vmatpush.msrb.mxu0 %v2959_v14 }
  0x4d   :  { %716 = vmatpush.msra.mxu2 %v2754_v15  ;;  %2323 = vmatmul.msk.f32.gmra.mxu0 %vm105_vm0, %v85_v46  ;;  %v2961_v15 = vld [vmem:[#allocation10 + $0x8] sm:$0xff] }
  0x4e   :  { %2347 = vmatmul.msk.f32.gmra.mxu3 %vm105_vm0, %v85_v46  ;;  %455 = vmatpush.msrb.mxu1 %v2961_v15 }
  0x4f   :  { %717 = vmatpush.msra.mxu2 %v2757_v16  ;;  %v2968_v16 = vld [vmem:[#allocation10 + $0xf8] sm:$0xff]  ;;  %666 = vmatpush.msra.mxu0 %v2794_v37 }
  0x50   :  { %2340 = vmatmul.msk.f32.gmra.mxu2 %vm105_vm0, %v86_v47  ;;  %488 = vmatpush.msrb.mxu3 %v2968_v16 }
  0x51   :  { %718 = vmatpush.msra.mxu2 %v2762_v18  ;;  %v2976_v18 = vld [vmem:[#allocation10 + $0xb8] sm:$0xff]  ;;  %686 = vmatpush.msra.mxu1 %v2796_v38 }
  0x52   :  { %489 = vmatpush.msrb.mxu3 %v2973_v17  ;;  %667 = vmatpush.msra.mxu0 %v2798_v39 }
  0x53   :  { %719 = vmatpush.msra.mxu2 %v2767_v19  ;;  %v2981_v19 = vld [vmem:[#allocation10 + $0x98] sm:$0xff]  ;;  %687 = vmatpush.msra.mxu1 %v2801_v41 }
  0x54   :  { %2332 = vmatmul.msk.f32.gmra.mxu1 %vm105_vm0, %v86_v47  ;;  %490 = vmatpush.msrb.mxu3 %v2976_v18 }
  0x55   :  { %720 = vmatpush.msra.mxu2 %v2774_v24  ;;  %2324 = vmatmul.msk.f32.gmra.mxu0 %vm105_vm0, %v86_v47  ;;  %v2998_v24 = vld [vmem:[#allocation10 + $0x38] sm:$0xff] }
  0x56   :  { %2348 = vmatmul.msk.f32.gmra.mxu3 %vm105_vm0, %v86_v47  ;;  %668 = vmatpush.msra.mxu0 %v2806_v42 }
  0x57   :  { %721 = vmatpush.msra.mxu2 %v2779_v27  ;;  %688 = vmatpush.msra.mxu1 %v2809_v43  ;;  %v3012_v27 = vperm.slane %v3003_v25, 2 }
  0x58   :  { %476 = vmatmul.f32.vlgmr.msrb.gmra.mxu2 %v2671_v20  ;;  %491 = vmatpush.msrb.mxu3 %v2981_v19 }
  0x59   :  { %669 = vmatpush.msra.mxu0 %v2814_v44  ;;  %689 = vmatpush.msra.mxu1 %v2819_v45 }
  0x5a   :  { %492 = vmatpush.msrb.mxu3 %v2988_v21 }
  0x5b   :  { %670 = vmatpush.msra.mxu0 %v2872_v48  ;;  %690 = vmatpush.msra.mxu1 %v2874_v49 }
  0x5c   :  { %456 = vmatmul.f32.vlgmr.msrb.gmra.mxu1 %v2671_v20  ;;  %493 = vmatpush.msrb.mxu3 %v2995_v23 }
  0x5d   :  { %436 = vmatmul.f32.vlgmr.msrb.gmra.mxu0 %v2671_v20  ;;  %691 = vmatpush.msra.mxu1 %v2880_v51 }
  0x5e   :  { %671 = vmatpush.msra.mxu0 %v2878_v50  ;;  %494 = vmatpush.msrb.mxu3 %v2998_v24 }
  0x5f   :  { %692 = vmatpush.msra.mxu1 %v2884_v53 }
  0x60   :  { %672 = vmatpush.msra.mxu0 %v2882_v52  ;;  %495 = vmatpush.msrb.mxu3 %v3005_v26 }
  0x61   :  { %496 = vmatmul.f32.vlgmr.msrb.gmra.mxu3 %v2671_v20  ;;  %693 = vmatpush.msra.mxu1 %v2890_v55 }
  0x62   :  { %673 = vmatpush.msra.mxu0 %v2888_v54  ;;  %726 = vmatpush.msra.mxu3 %v2896_v56 }
  0x63   :  { %694 = vmatpush.msra.mxu1 %v2901_v58 }
  0x64   :  { %674 = vmatpush.msra.mxu0 %v2899_v57  ;;  %727 = vmatpush.msra.mxu3 %v2905_v59 }
  0x65   :  { %695 = vmatpush.msra.mxu1 %v2909_v61 }
  0x66   :  { %675 = vmatpush.msra.mxu0 %v2907_v60  ;;  %728 = vmatpush.msra.mxu3 %v2912_v62 }
  0x67   :  { %696 = vmatpush.msra.mxu1 %v2916_v0 }
  0x68   :  { %676 = vmatpush.msra.mxu0 %v2914_v63  ;;  %729 = vmatpush.msra.mxu3 %v2920_v1 }
  0x69   :  { %697 = vmatpush.msra.mxu1 %v2925_v3 }
  0x6a   :  { %677 = vmatpush.msra.mxu0 %v2923_v2  ;;  %730 = vmatpush.msra.mxu3 %v2932_v4 }
  0x6b   :  { %698 = vmatpush.msra.mxu1 %v2937_v6 }
  0x6c   :  { %678 = vmatpush.msra.mxu0 %v2935_v5  ;;  %731 = vmatpush.msra.mxu3 %v2941_v7 }
  0x6d   :  { %699 = vmatpush.msra.mxu1 %v2945_v9 }
  0x6e   :  { %679 = vmatpush.msra.mxu0 %v2943_v8  ;;  %732 = vmatpush.msra.mxu3 %v2948_v10 }
  0x6f   :  { %700 = vmatpush.msra.mxu1 %v2952_v12 }
  0x70   :  { %680 = vmatpush.msra.mxu0 %v2950_v11  ;;  %733 = vmatpush.msra.mxu3 %v2956_v13 }
  0x71   :  { %701 = vmatpush.msra.mxu1 %v2961_v15 }
  0x72   :  { %681 = vmatpush.msra.mxu0 %v2959_v14  ;;  %734 = vmatpush.msra.mxu3 %v2968_v16 }
  0x73   :  { %932 = vmatpush.msrb.mxu1 %v2796_v38 }
  0x74   :  { %912 = vmatpush.msrb.mxu0 %v2794_v37  ;;  %735 = vmatpush.msra.mxu3 %v2973_v17 }
  0x75   :  { %933 = vmatpush.msrb.mxu1 %v2801_v41 }
  0x76   :  { %913 = vmatpush.msrb.mxu0 %v2798_v39  ;;  %736 = vmatpush.msra.mxu3 %v2976_v18 }
  0x77   :  { %934 = vmatpush.msrb.mxu1 %v2809_v43 }
  0x78   :  { %914 = vmatpush.msrb.mxu0 %v2806_v42  ;;  %737 = vmatpush.msra.mxu3 %v2981_v19 }
  0x79   :  { %935 = vmatpush.msrb.mxu1 %v2819_v45 }
  0x7a   :  { %915 = vmatpush.msrb.mxu0 %v2814_v44  ;;  %738 = vmatpush.msra.mxu3 %v2988_v21 }
  0x7b   :  { %936 = vmatpush.msrb.mxu1 %v2874_v49 }
  0x7c   :  { %916 = vmatpush.msrb.mxu0 %v2872_v48  ;;  %739 = vmatpush.msra.mxu3 %v2995_v23 }
  0x7d   :  { %937 = vmatpush.msrb.mxu1 %v2880_v51 }
  0x7e   :  { %917 = vmatpush.msrb.mxu0 %v2878_v50  ;;  %740 = vmatpush.msra.mxu3 %v2998_v24 }
  0x7f   :  { %938 = vmatpush.msrb.mxu1 %v2884_v53  ;;  %v3126_v53 = vperm.slane %v3003_v25, 1 }
  0x80   :  { %918 = vmatpush.msrb.mxu0 %v2882_v52  ;;  %741 = vmatpush.msra.mxu3 %v3005_v26  ;;  %v3123_v52 = vperm.slane %v3003_v25, 0 }
  0x81   :  { %939 = vmatpush.msrb.mxu1 %v2890_v55 }
  0x82   :  { %919 = vmatpush.msrb.mxu0 %v2888_v54  ;;  %972 = vmatpush.msrb.mxu3 %v2896_v56 }
  0x83   :  { %940 = vmatpush.msrb.mxu1 %v2901_v58 }
  0x84   :  { %920 = vmatpush.msrb.mxu0 %v2899_v57  ;;  %973 = vmatpush.msrb.mxu3 %v2905_v59 }
  0x85   :  { %941 = vmatpush.msrb.mxu1 %v2909_v61 }
  0x86   :  { %921 = vmatpush.msrb.mxu0 %v2907_v60  ;;  %974 = vmatpush.msrb.mxu3 %v2912_v62 }
  0x87   :  { %942 = vmatpush.msrb.mxu1 %v2916_v0 }
  0x88   :  { %922 = vmatpush.msrb.mxu0 %v2914_v63  ;;  %975 = vmatpush.msrb.mxu3 %v2920_v1  ;;  %v3149_v1 = vperm.slane %v3003_v25, 3 }
  0x89   :  { %943 = vmatpush.msrb.mxu1 %v2925_v3 }
  0x8a   :  { %923 = vmatpush.msrb.mxu0 %v2923_v2  ;;  %976 = vmatpush.msrb.mxu3 %v2932_v4 }
  0x8b   :  { %944 = vmatpush.msrb.mxu1 %v2937_v6 }
  0x8c   :  { %924 = vmatpush.msrb.mxu0 %v2935_v5  ;;  %977 = vmatpush.msrb.mxu3 %v2941_v7 }
  0x8d   :  { %945 = vmatpush.msrb.mxu1 %v2945_v9 }
  0x8e   :  { %925 = vmatpush.msrb.mxu0 %v2943_v8  ;;  %978 = vmatpush.msrb.mxu3 %v2948_v10 }
  0x8f   :  { %946 = vmatpush.msrb.mxu1 %v2952_v12 }
  0x90   :  { %926 = vmatpush.msrb.mxu0 %v2950_v11  ;;  %979 = vmatpush.msrb.mxu3 %v2956_v13 }
  0x91   :  { %947 = vmatpush.msrb.mxu1 %v2961_v15 }
  0x92   :  { %927 = vmatpush.msrb.mxu0 %v2959_v14  ;;  %980 = vmatpush.msrb.mxu3 %v2968_v16 }
  0x94   :  { %981 = vmatpush.msrb.mxu3 %v2973_v17 }
  0x96   :  { %982 = vmatpush.msrb.mxu3 %v2976_v18 }
  0x98   :  { %983 = vmatpush.msrb.mxu3 %v2981_v19 }
  0x99   :  { %v3110_v41 = vpop.f32.mrf.mxu0  ;;  %v3112_v42 = vpop.f32.mrf.mxu1 }
  0x9a   :  { %984 = vmatpush.msrb.mxu3 %v2988_v21 }
  0x9b   :  { %v2991_v22 = vpop.f32.mrf.mxu2 }
  0x9c   :  { %v230_v43 = vadd.f32 %v2991_v22, %v3012_v27  ;;  %985 = vmatpush.msrb.mxu3 %v2995_v23 }
  0x9e   :  { %986 = vmatpush.msrb.mxu3 %v2998_v24 }
  0xa0   :  { %987 = vmatpush.msrb.mxu3 %v3005_v26 }
  0xa1   :  { %v191_v47 = vpop.f32.mrf.mxu1  ;;  %v3128_v54 = vpop.f32.mrf.mxu3 }
  0xa2   :  { %v150_v46 = vpop.f32.mrf.mxu0  ;;  %v3134_v57 = vadd.f32 %v191_v47, %v3126_v53 }
  0xa3   :  { %v232_v28 = vpop.f32.mrf.mxu2  ;;  %v3131_v56 = vadd.f32 %v150_v46, %v3123_v52 }
  0xa4   :  { %v3019_v29 = vadd.f32 %v232_v28, %v3012_v27 }
  0xa9   :  { %v194_v51 = vpop.f32.mrf.mxu1  ;;  %v273_v2 = vpop.f32.mrf.mxu3 }
  0xaa   :  { %v153_v50 = vpop.f32.mrf.mxu0  ;;  %v3140_v60 = vadd.f32 %v194_v51, %v3126_v53  ;;  %v3152_v3 = vadd.f32 %v273_v2, %v3149_v1 }
  0xab   :  { %v235_v30 = vpop.f32.mrf.mxu2  ;;  %v3137_v59 = vadd.f32 %v153_v50, %v3123_v52  ;;  %v189_v50 = vadd.f32 %v3112_v42, %v3126_v53  ;;  %v271_v42 = vadd.f32 %v3128_v54, %v3149_v1 }
  0xac   :  { %v3034_v31 = vadd.f32 %v235_v30, %v3012_v27 }
  0xb1   :  { %v197_v62 = vpop.f32.mrf.mxu1  ;;  %v276_v14 = vpop.f32.mrf.mxu3 }
  0xb2   :  { %v156_v61 = vpop.f32.mrf.mxu0  ;;  %v3146_v0 = vadd.f32 %v197_v62, %v3126_v53  ;;  %v3162_v15 = vadd.f32 %v276_v14, %v3149_v1 }
  0xb3   :  { %v238_v32 = vpop.f32.mrf.mxu2  ;;  %v3143_v63 = vadd.f32 %v156_v61, %v3123_v52 }
  0xb4   :  { %v3050_v33 = vadd.f32 %v238_v32, %v3012_v27  ;;  %3883 = vst [vmem:[#allocation23_spill] sm:$0xff] %v3146_v0 }
  0xb5   :  { %3882 = vst [vmem:[#allocation22_spill] sm:$0xff] %v3143_v63 }
  0xb6   :  { %3878 = vst [vmem:[#allocation18_spill] sm:$0xff] %v3050_v33 }
  0xb9   :  { %v200_v6 = vpop.f32.mrf.mxu1  ;;  %v279_v30 = vpop.f32.mrf.mxu3 }
  0xba   :  { %v159_v5 = vpop.f32.mrf.mxu0  ;;  %v3158_v9 = vadd.f32 %v200_v6, %v3126_v53 }
  0xbb   :  { %v241_v34 = vpop.f32.mrf.mxu2  ;;  %v3155_v8 = vadd.f32 %v159_v5, %v3123_v52 }
  0xbc   :  { %v3065_v35 = vadd.f32 %v241_v34, %v3012_v27  ;;  %3885 = vst [vmem:[#allocation25_spill] sm:$0xff] %v3158_v9  ;;  %v3171_v34 = vadd.f32 %v279_v30, %v3149_v1 }
  0xbd   :  { %3884 = vst [vmem:[#allocation24_spill] sm:$0xff] %v3155_v8 }
  0xbe   :  { %3879 = vst [vmem:[#allocation19_spill] sm:$0xff] %v3065_v35 }
  0xbf   :  { %3888 = vst [vmem:[#allocation28_spill] sm:$0xff] %v3171_v34 }
  0xc1   :  { %v203_v21 = vpop.f32.mrf.mxu1 }
  0xc2   :  { %v162_v19 = vpop.f32.mrf.mxu0  ;;  %v3168_v23 = vadd.f32 %v203_v21, %v3126_v53 }
  0xc3   :  { %v244_v36 = vpop.f32.mrf.mxu2 }
  0xc4   :  { %v3081_v37 = vadd.f32 %v244_v36, %v3012_v27  ;;  %3887 = vst [vmem:[#allocation27_spill] sm:$0xff] %v3168_v23 }
  0xc6   :  { %3880 = vst [vmem:[#allocation20_spill] sm:$0xff] %v3081_v37  ;;  %v3421_v37 = vld [vmem:[#allocation10 + $0x18] sm:$0xff] }
  0xcb   :  { %v247_v38 = vpop.f32.mrf.mxu2 }
  0xcc   :  { %v3096_v39 = vadd.f32 %v247_v38, %v3012_v27 }
  0xce   :  { %3881 = vst [vmem:[#allocation21_spill] sm:$0xff] %v3096_v39 }
  0xd3   :  { %v250_v40 = vpop.f32.mrf.mxu2 }
  0xd4   :  { %v165_v40 = vpop.f32.mrf.mxu0 }
  0xdb   :  { %v477_v44 = vpop.f32.mrf.mxu2 }
  0xdc   :  { %v502_v45 = vadd.f32 %v477_v44, %v230_v43  ;;  %v206_v43 = vpop.f32.mrf.mxu1  ;;  %v168_v47 = vpop.f32.mrf.mxu0 }
  0xde   :  { %2383 = vtanh.f32 %v502_v45  ;;  %v282_v45 = vpop.f32.mrf.mxu3 }
  0xdf   :  { %v3174_v46 = vadd.f32 %v282_v45, %v3149_v1 }
  0xe1   :  { %3889 = vst [vmem:[#allocation29_spill] sm:$0xff] %v3174_v46 }
  0xe4   :  { %v2384_v48 = vpop.eup %2383 }
  0xe5   :  { %v2351_v49 = vmul.f32 -1.442695, %v2384_v48  ;;  %v209_v48 = vpop.f32.mrf.mxu1 }
  0xe6   :  { %v285_v51 = vpop.f32.mrf.mxu3 }
  0xe7   :  { %2385 = vpow2.f32 %v2351_v49  ;;  %v148_v49 = vadd.f32 %v3110_v41, %v3123_v52 }
  0xed   :  { %v2386_v55 = vpop.eup %2385  ;;  %v457_v61 = vpop.f32.mrf.mxu1 }
  0xee   :  { %v519_v58 = vadd.f32 1.0, %v2386_v55  ;;  %v3181_v55 = vadd.f32 %v285_v51, %v3149_v1  ;;  %v501_v2 = vadd.f32 %v457_v61, %v189_v50  ;;  %v3188_v51 = vld [vmem:[#allocation10 + $0x1f0] sm:$0xff] }
  0xef   :  { %952 = vmatpush.msrb.mxu2 %v3188_v51  ;;  %v3194_v61 = vld [vmem:[#allocation10 + $0x1b0] sm:$0xff] }
  0xf0   :  { %2387 = vrcp.f32 %v519_v58  ;;  %v561_v11 = vand.u32 2147483648, %v519_v58  ;;  %v559_v13 = vand.u32 2147483647, %v519_v58  ;;  %vm555_vm2 = vweird.f32 %v519_v58  ;;  %3890 = vst [vmem:[#allocation30_spill] sm:$0xff] %v3181_v55 }
  0xf1   :  { %2389 = vtanh.f32 %v2671_v20  ;;  %v3165_v20 = vadd.f32 %v162_v19, %v3123_v52 }
  0xf2   :  { %v562_v18 = vor.u32 1.1754944e-38, %v561_v11  ;;  %vm560_vm4 = vcmp.eq.f32.partialorder %v559_v13, 8.507059e+37 }
  0xf3   :  { %3886 = vst [vmem:[#allocation26_spill] sm:$0xff] %v3165_v20 }
  0xf6   :  { %v2388_v4 = vpop.eup %2387 }
  0xf7   :  { %v551_v7 = vmul.f32 %v2388_v4, %v519_v58  ;;  %vm556_vm1 = vweird.f32 %v2388_v4  ;;  %v2390_v17 = vpop.eup %2389  ;;  %v437_v58 = vpop.f32.mrf.mxu0 }
  0xf8   :  { %vm557_vm3 = vmor %vm555_vm2, %vm556_vm1  ;;  %v500_v62 = vadd.f32 %v437_v58, %v148_v49  ;;  %v3191_v58 = vld [vmem:[#allocation10 + $0x1d0] sm:$0xff] }
  0xf9   :  { %v552_v10 = vsub.f32 1.0, %v551_v7  ;;  %953 = vmatpush.msrb.mxu2 %v3191_v58 }
  0xfa   :  { %2391 = vtanh.f32 %v500_v62  ;;  %v3197_v62 = vld [vmem:[#allocation10 + $0x190] sm:$0xff] }
  0xfb   :  { %v553_v12 = vmul.f32 %v2388_v4, %v552_v10  ;;  %2393 = vtanh.f32 %v501_v2  ;;  %954 = vmatpush.msrb.mxu2 %v3194_v61  ;;  %v3200_v2 = vld [vmem:[#allocation10 + $0x170] sm:$0xff] }
  0xfd   :  { %v554_v16 = vadd.f32 %v2388_v4, %v553_v12  ;;  %955 = vmatpush.msrb.mxu2 %v3197_v62 }
  0xff   :  { %v558_v22 = vsel %vm557_vm3, %v2388_v4, %v554_v16  ;;  %v288_v4 = vpop.f32.mrf.mxu3  ;;  %956 = vmatpush.msrb.mxu2 %v3200_v2 }
 0x100   :  { %v563_v24 = vsel %vm560_vm4, %v562_v18, %v558_v22  ;;  %v2392_v5 = vpop.eup %2391  ;;  %v3203_v4 = vld [vmem:[#allocation10 + $0x150] sm:$0xff] }
 0x101   :  { %v572_v25 = vmul.f32 %v2390_v17, %v563_v24  ;;  %v2394_v6 = vpop.eup %2393  ;;  %v2349_v7 = vmul.f32 -1.442695, %v2392_v5  ;;  %957 = vmatpush.msrb.mxu2 %v3203_v4 }
 0x102   :  { %v2350_v10 = vmul.f32 -1.442695, %v2394_v6 }
 0x103   :  { %v576_v26 = vrot.slane %v572_v25, 1  ;;  %v577_v27 = vrot.slane %v572_v25, 2  ;;  %v578_v28 = vrot.slane %v572_v25, 3  ;;  %590 = vst [vmem:[#allocation13 + $0x1] sm:$0x1] %v572_v25  ;;  %682 = vmatmul.f32.vlgmr.msra.gmra.mxu0 %v572_v25  ;;  %702 = vmatmul.f32.vlgmr.msra.gmra.mxu1 %v572_v25  ;;  %v579_v32 = vrot.slane %v572_v25, 4 }
 0x104   :  { %722 = vmatmul.f32.vlgmr.msra.gmra.mxu2 %v572_v25  ;;  %742 = vmatmul.f32.vlgmr.msra.gmra.mxu3 %v572_v25  ;;  %v580_v36 = vrot.slane %v572_v25, 5  ;;  %v581_v38 = vrot.slane %v572_v25, 6  ;;  %v582_v44 = vrot.slane %v572_v25, 7  ;;  %2395 = vpow2.f32 %v2349_v7 }
 0x105   :  { %591 = vst [vmem:[#allocation13 + $0x9] sm:$0x1] %v576_v26  ;;  %2397 = vpow2.f32 %v2350_v10 }
 0x106   :  { %592 = vst [vmem:[#allocation13 + $0x11] sm:$0x1] %v577_v27 }
 0x107   :  { %593 = vst [vmem:[#allocation13 + $0x19] sm:$0x1] %v578_v28  ;;  %v291_v41 = vpop.f32.mrf.mxu3 }
 0x108   :  { %594 = vst [vmem:[#allocation13 + $0x21] sm:$0x1] %v579_v32  ;;  %v3208_v41 = vld [vmem:[#allocation10 + $0x130] sm:$0xff] }
 0x109   :  { %595 = vst [vmem:[#allocation13 + $0x29] sm:$0x1] %v580_v36  ;;  %958 = vmatpush.msrb.mxu2 %v3208_v41 }
 0x10a   :  { %596 = vst [vmem:[#allocation13 + $0x31] sm:$0x1] %v581_v38  ;;  %v2396_v52 = vpop.eup %2395 }
 0x10b   :  { %597 = vst [vmem:[#allocation13 + $0x39] sm:$0x1] %v582_v44  ;;  %v2398_v53 = vpop.eup %2397  ;;  %v517_v11 = vadd.f32 1.0, %v2396_v52  ;;  %v3211_v52 = vld [vmem:[#allocation10 + $0x110] sm:$0xff] }
 0x10c   :  { %v518_v12 = vadd.f32 1.0, %v2398_v53  ;;  %959 = vmatpush.msrb.mxu2 %v3211_v52 }
 0x10d   :  { %2399 = vrcp.f32 %v517_v11  ;;  %vm525_vm5 = vweird.f32 %v517_v11  ;;  %v531_v19 = vand.u32 2147483648, %v517_v11  ;;  %v529_v22 = vand.u32 2147483647, %v517_v11 }
 0x10e   :  { %2401 = vrcp.f32 %v518_v12  ;;  %vm540_vm7 = vweird.f32 %v518_v12  ;;  %v546_v54 = vand.u32 2147483648, %v518_v12  ;;  %v544_v26 = vand.u32 2147483647, %v518_v12 }
 0x10f   :  { %v497_v13 = vpop.f32.mrf.mxu3  ;;  %v532_v28 = vor.u32 1.1754944e-38, %v531_v19  ;;  %vm530_vm10 = vcmp.eq.f32.partialorder %v529_v22, 8.507059e+37  ;;  %v3227_v19 = vld [vmem:[#allocation10 + $0x70] sm:$0xff] }
 0x110   :  { %v503_v14 = vadd.f32 %v497_v13, %v271_v42  ;;  %v547_v36 = vor.u32 1.1754944e-38, %v546_v54  ;;  %vm545_vm12 = vcmp.eq.f32.partialorder %v544_v26, 8.507059e+37  ;;  %v3214_v42 = vld [vmem:[#allocation10 + $0xf0] sm:$0xff] }
 0x111   :  { %960 = vmatpush.msrb.mxu2 %v3214_v42 }
 0x112   :  { %2403 = vtanh.f32 %v503_v14 }
 0x113   :  { %v2400_v16 = vpop.eup %2399 }
 0x114   :  { %v2402_v17 = vpop.eup %2401  ;;  %v521_v18 = vmul.f32 %v2400_v16, %v517_v11  ;;  %vm526_vm6 = vweird.f32 %v2400_v16  ;;  %v3217_v11 = vld [vmem:[#allocation10 + $0xd0] sm:$0xff] }
 0x115   :  { %v536_v21 = vmul.f32 %v2402_v17, %v518_v12  ;;  %vm541_vm8 = vweird.f32 %v2402_v17  ;;  %vm527_vm9 = vmor %vm525_vm5, %vm526_vm6  ;;  %961 = vmatpush.msrb.mxu2 %v3217_v11  ;;  %v3221_v12 = vld [vmem:[#allocation10 + $0xb0] sm:$0xff] }
 0x116   :  { %v522_v25 = vsub.f32 1.0, %v521_v18  ;;  %vm542_vm11 = vmor %vm540_vm7, %vm541_vm8 }
 0x117   :  { %v537_v1 = vsub.f32 1.0, %v536_v21  ;;  %962 = vmatpush.msrb.mxu2 %v3221_v12 }
 0x118   :  { %v2404_v24 = vpop.eup %2403  ;;  %v523_v27 = vmul.f32 %v2400_v16, %v522_v25  ;;  %v3234_v25 = vld [vmem:[#allocation10 + $0x30] sm:$0xff] }
 0x119   :  { %2405 = vtanh.f32 %v2404_v24  ;;  %v538_v30 = vmul.f32 %v2402_v17, %v537_v1 }
 0x11a   :  { %v524_v32 = vadd.f32 %v2400_v16, %v523_v27  ;;  %v3237_v27 = vld [vmem:[#allocation10 + $0x10] sm:$0xff] }
 0x11b   :  { %v539_v38 = vadd.f32 %v2402_v17, %v538_v30 }
 0x11c   :  { %v528_v40 = vsel %vm527_vm9, %v2400_v16, %v524_v32 }
 0x11d   :  { %v533_v44 = vsel %vm530_vm10, %v532_v28, %v528_v40  ;;  %v543_v45 = vsel %vm542_vm11, %v2402_v17, %v539_v38  ;;  %v3224_v17 = vld [vmem:[#allocation10 + $0x90] sm:$0xff] }
 0x11e   :  { %v548_v47 = vsel %vm545_vm12, %v547_v36, %v543_v45  ;;  %v567_v48 = vmul.f32 0.0, %v533_v44  ;;  %963 = vmatpush.msrb.mxu2 %v3224_v17 }
 0x11f   :  { %v2406_v43 = vpop.eup %2405 }
 0x120   :  { %v568_v49 = vmul.f32 %v2406_v43, %v548_v47  ;;  %964 = vmatpush.msrb.mxu2 %v3227_v19 }
 0x122   :  { %v3186_v50 = vadd.f32 %v568_v49, %v567_v48 }
 0x180   :  { %v683_v5 = vpop.f32.mrf.mxu0  ;;  %v703_v6 = vpop.f32.mrf.mxu1 }
 0x181   :  { %v746_v7 = vadd.f32 %v683_v5, %v3131_v56  ;;  %v747_v10 = vadd.f32 %v703_v6, %v3134_v57 }
 0x183   :  { %2407 = vtanh.f32 %v746_v7 }
 0x184   :  { %2409 = vtanh.f32 %v747_v10 }
 0x187   :  { %v723_v53 = vpop.f32.mrf.mxu2  ;;  %v743_v18 = vpop.f32.mrf.mxu3 }
 0x188   :  { %v748_v56 = vadd.f32 %v723_v53, %v3019_v29  ;;  %v3230_v29 = vld [vmem:[#allocation10 + $0x50] sm:$0xff]  ;;  %v749_v22 = vadd.f32 %v743_v18, %v3152_v3 }
 0x189   :  { %v2408_v57 = vpop.eup %2407  ;;  %965 = vmatpush.msrb.mxu2 %v3230_v29 }
 0x18a   :  { %v2410_v13 = vpop.eup %2409  ;;  %v2352_v14 = vmul.f32 -1.442695, %v2408_v57  ;;  %2411 = vtanh.f32 %v748_v56 }
 0x18b   :  { %v2353_v16 = vmul.f32 -1.442695, %v2410_v13  ;;  %966 = vmatpush.msrb.mxu2 %v3234_v25 }
 0x18c   :  { %2413 = vpow2.f32 %v2352_v14 }
 0x18d   :  { %2415 = vpow2.f32 %v2353_v16  ;;  %967 = vmatpush.msrb.mxu2 %v3237_v27 }
 0x18f   :  { %1198 = vmatpush.msra.mxu2 %v3188_v51 }
 0x190   :  { %v2412_v21 = vpop.eup %2411 }
 0x191   :  { %v2354_v24 = vmul.f32 -1.442695, %v2412_v21  ;;  %1199 = vmatpush.msra.mxu2 %v3191_v58 }
 0x192   :  { %v2414_v54 = vpop.eup %2413 }
 0x193   :  { %v2416_v1 = vpop.eup %2415  ;;  %v763_v26 = vadd.f32 1.0, %v2414_v54  ;;  %2417 = vpow2.f32 %v2354_v24  ;;  %1200 = vmatpush.msra.mxu2 %v3194_v61 }
 0x194   :  { %v764_v28 = vadd.f32 1.0, %v2416_v1  ;;  %2419 = vtanh.f32 %v749_v22 }
 0x195   :  { %2421 = vrcp.f32 %v763_v26  ;;  %1201 = vmatpush.msra.mxu2 %v3197_v62  ;;  %v777_v45 = vand.u32 2147483648, %v763_v26  ;;  %v775_v49 = vand.u32 2147483647, %v763_v26  ;;  %vm771_vm15 = vweird.f32 %v763_v26 }
 0x196   :  { %2423 = vrcp.f32 %v764_v28  ;;  %v792_v5 = vand.u32 2147483648, %v764_v28  ;;  %v790_v7 = vand.u32 2147483647, %v764_v28  ;;  %vm786_vm1 = vweird.f32 %v764_v28 }
 0x197   :  { %1202 = vmatpush.msra.mxu2 %v3200_v2  ;;  %v778_v56 = vor.u32 1.1754944e-38, %v777_v45  ;;  %vm776_vm2 = vcmp.eq.f32.partialorder %v775_v49, 8.507059e+37 }
 0x198   :  { %v793_v16 = vor.u32 1.1754944e-38, %v792_v5  ;;  %vm791_vm4 = vcmp.eq.f32.partialorder %v790_v7, 8.507059e+37 }
 0x199   :  { %v2418_v3 = vpop.eup %2417  ;;  %1203 = vmatpush.msra.mxu2 %v3203_v4 }
 0x19a   :  { %v2420_v30 = vpop.eup %2419  ;;  %v765_v32 = vadd.f32 1.0, %v2418_v3 }
 0x19b   :  { %v2422_v36 = vpop.eup %2421  ;;  %1204 = vmatpush.msra.mxu2 %v3208_v41 }
 0x19c   :  { %v2424_v38 = vpop.eup %2423  ;;  %v767_v40 = vmul.f32 %v2422_v36, %v763_v26  ;;  %2425 = vrcp.f32 %v765_v32  ;;  %vm772_vm13 = vweird.f32 %v2422_v36  ;;  %v807_v54 = vand.u32 2147483648, %v765_v32 }
 0x19d   :  { %v782_v43 = vmul.f32 %v2424_v38, %v764_v28  ;;  %2427 = vtanh.f32 %v2420_v30  ;;  %vm787_vm14 = vweird.f32 %v2424_v38  ;;  %vm773_vm0 = vmor %vm771_vm15, %vm772_vm13  ;;  %1205 = vmatpush.msra.mxu2 %v3211_v52  ;;  %v805_v3 = vand.u32 2147483647, %v765_v32 }
 0x19e   :  { %v768_v44 = vsub.f32 1.0, %v767_v40  ;;  %vm788_vm3 = vmor %vm786_vm1, %vm787_vm14  ;;  %2429 = vtanh.f32 %v3186_v50  ;;  %vm801_vm6 = vweird.f32 %v765_v32 }
 0x19f   :  { %v783_v47 = vsub.f32 1.0, %v782_v43  ;;  %1206 = vmatpush.msra.mxu2 %v3214_v42  ;;  %vm806_vm8 = vcmp.eq.f32.partialorder %v805_v3, 8.507059e+37  ;;  %v3361_v3 = vld [vmem:[#allocation10 + $0xc8] sm:$0xff] }
 0x1a0   :  { %v769_v48 = vmul.f32 %v2422_v36, %v768_v44 }
 0x1a1   :  { %v784_v6 = vmul.f32 %v2424_v38, %v783_v47  ;;  %1207 = vmatpush.msra.mxu2 %v3217_v11 }
 0x1a2   :  { %v2426_v10 = vpop.eup %2425  ;;  %v770_v53 = vadd.f32 %v2422_v36, %v769_v48 }
 0x1a3   :  { %v797_v57 = vmul.f32 %v2426_v10, %v765_v32  ;;  %v785_v13 = vadd.f32 %v2424_v38, %v784_v6  ;;  %v2428_v18 = vpop.eup %2427  ;;  %vm802_vm5 = vweird.f32 %v2426_v10  ;;  %1208 = vmatpush.msra.mxu2 %v3221_v12 }
 0x1a4   :  { %v774_v14 = vsel %vm773_vm0, %v2422_v36, %v770_v53  ;;  %vm803_vm7 = vmor %vm801_vm6, %vm802_vm5  ;;  %v2430_v44 = vpop.eup %2429  ;;  %v3325_v53 = vld [vmem:[#allocation10 + $0x158] sm:$0xff] }
 0x1a5   :  { %v798_v21 = vsub.f32 1.0, %v797_v57  ;;  %v779_v22 = vsel %vm776_vm2, %v778_v56, %v774_v14  ;;  %v789_v24 = vsel %vm788_vm3, %v2424_v38, %v785_v13  ;;  %v808_v38 = vor.u32 1.1754944e-38, %v807_v54  ;;  %1209 = vmatpush.msra.mxu2 %v3224_v17  ;;  %v3352_v54 = vld [vmem:[#allocation10 + $0xe8] sm:$0xff] }
 0x1a6   :  { %v794_v1 = vsel %vm791_vm4, %v793_v16, %v789_v24  ;;  %v813_v26 = vmul.f32 %v779_v22, %v3186_v50  ;;  %v3332_v16 = vld [vmem:[#allocation10 + $0x120] sm:$0xff] }
 0x1a7   :  { %v799_v28 = vmul.f32 %v2426_v10, %v798_v21  ;;  %v814_v30 = vmul.f32 %v2428_v18, %v794_v1  ;;  %1210 = vmatpush.msra.mxu2 %v3227_v19  ;;  %3893 = vst [vmem:[#allocation33_spill] sm:$0xff] %v3332_v16  ;;  %v3334_v18 = vld [vmem:[#allocation10 + $0x128] sm:$0xff]  ;;  %v3336_v21 = vld [vmem:[#allocation10 + $0x138] sm:$0xff]  ;;  %v3341_v22 = vld [vmem:[#allocation10 + $0x100] sm:$0xff] }
 0x1a8   :  { %3894 = vst [vmem:[#allocation34_spill] sm:$0xff] %v3336_v21  ;;  %v3350_v24 = vld [vmem:[#allocation10 + $0xe0] sm:$0xff]  ;;  %v3354_v1 = vld [vmem:[#allocation10 + $0xf8] sm:$0xff] }
 0x1a9   :  { %v800_v36 = vadd.f32 %v2426_v10, %v799_v28  ;;  %v3252_v40 = vadd.f32 %v814_v30, %v813_v26  ;;  %1211 = vmatpush.msra.mxu2 %v3230_v29  ;;  %v3359_v28 = vld [vmem:[#allocation10 + $0xc0] sm:$0xff]  ;;  %v3363_v30 = vld [vmem:[#allocation10 + $0xd8] sm:$0xff] }
 0x1ab   :  { %v804_v43 = vsel %vm803_vm7, %v2426_v10, %v800_v36  ;;  %1212 = vmatpush.msra.mxu2 %v3234_v25  ;;  %v3323_v10 = vld [vmem:[#allocation10 + $0x148] sm:$0xff] }
 0x1ac   :  { %v809_v50 = vsel %vm806_vm8, %v808_v38, %v804_v43  ;;  %3892 = vst [vmem:[#allocation32_spill] sm:$0xff] %v3323_v10  ;;  %v3369_v43 = vld [vmem:[#allocation10 + $0xa0] sm:$0xff] }
 0x1ad   :  { %v818_v45 = vmul.f32 %v2430_v44, %v809_v50  ;;  %1213 = vmatpush.msra.mxu2 %v3237_v27  ;;  %v3371_v44 = vld [vmem:[#allocation10 + $0xa8] sm:$0xff]  ;;  %v3373_v50 = vld [vmem:[#allocation10 + $0xb8] sm:$0xff] }
 0x1af   :  { %v822_v47 = vrot.slane %v818_v45, 1  ;;  %v823_v48 = vrot.slane %v818_v45, 2  ;;  %v824_v49 = vrot.slane %v818_v45, 3  ;;  %836 = vst [vmem:[#allocation13 + $0x2] sm:$0x1] %v818_v45  ;;  %928 = vmatmul.f32.vlgmr.msrb.gmra.mxu0 %v818_v45  ;;  %948 = vmatmul.f32.vlgmr.msrb.gmra.mxu1 %v818_v45  ;;  %v825_v32 = vrot.slane %v818_v45, 4 }
 0x1b0   :  { %968 = vmatmul.f32.vlgmr.msrb.gmra.mxu2 %v818_v45  ;;  %988 = vmatmul.f32.vlgmr.msrb.gmra.mxu3 %v818_v45  ;;  %v826_v5 = vrot.slane %v818_v45, 5  ;;  %v827_v6 = vrot.slane %v818_v45, 6  ;;  %v828_v7 = vrot.slane %v818_v45, 7 }
 0x1b1   :  { %837 = vst [vmem:[#allocation13 + $0xa] sm:$0x1] %v822_v47  ;;  %1444 = vmatpush.msrb.mxu2 %v3188_v51  ;;  %v3276_v51 = vld [vmem:[#allocation10 + $0x1e0] sm:$0xff] }
 0x1b2   :  { %838 = vst [vmem:[#allocation13 + $0x12] sm:$0x1] %v823_v48  ;;  %1158 = vmatpush.msra.mxu0 %v3276_v51  ;;  %v3378_v48 = vld [vmem:[#allocation10 + $0x80] sm:$0xff] }
 0x1b3   :  { %839 = vst [vmem:[#allocation13 + $0x1a] sm:$0x1] %v824_v49  ;;  %1445 = vmatpush.msrb.mxu2 %v3191_v58  ;;  %v3278_v58 = vld [vmem:[#allocation10 + $0x1e8] sm:$0xff] }
 0x1b4   :  { %840 = vst [vmem:[#allocation13 + $0x22] sm:$0x1] %v825_v32  ;;  %1178 = vmatpush.msra.mxu1 %v3278_v58  ;;  %v3380_v49 = vld [vmem:[#allocation10 + $0x88] sm:$0xff]  ;;  %v3382_v32 = vld [vmem:[#allocation10 + $0x98] sm:$0xff] }
 0x1b5   :  { %841 = vst [vmem:[#allocation13 + $0x2a] sm:$0x1] %v826_v5  ;;  %1446 = vmatpush.msrb.mxu2 %v3194_v61  ;;  %v3280_v61 = vld [vmem:[#allocation10 + $0x1f8] sm:$0xff] }
 0x1b6   :  { %842 = vst [vmem:[#allocation13 + $0x32] sm:$0x1] %v827_v6  ;;  %1218 = vmatpush.msra.mxu3 %v3280_v61  ;;  %v3387_v6 = vld [vmem:[#allocation10 + $0x60] sm:$0xff] }
 0x1b7   :  { %843 = vst [vmem:[#allocation13 + $0x3a] sm:$0x1] %v828_v7  ;;  %1447 = vmatpush.msrb.mxu2 %v3197_v62  ;;  %v3285_v62 = vld [vmem:[#allocation10 + $0x1c0] sm:$0xff]  ;;  %v3389_v7 = vld [vmem:[#allocation10 + $0x68] sm:$0xff] }
 0x1b8   :  { %1159 = vmatpush.msra.mxu0 %v3285_v62 }
 0x1b9   :  { %1448 = vmatpush.msrb.mxu2 %v3200_v2  ;;  %v3287_v2 = vld [vmem:[#allocation10 + $0x1c8] sm:$0xff] }
 0x1ba   :  { %1179 = vmatpush.msra.mxu1 %v3287_v2 }
 0x1bb   :  { %1449 = vmatpush.msrb.mxu2 %v3203_v4  ;;  %v3289_v4 = vld [vmem:[#allocation10 + $0x1d8] sm:$0xff] }
 0x1bc   :  { %1219 = vmatpush.msra.mxu3 %v3289_v4 }
 0x1bd   :  { %1450 = vmatpush.msrb.mxu2 %v3208_v41  ;;  %v3294_v41 = vld [vmem:[#allocation10 + $0x1a0] sm:$0xff] }
 0x1be   :  { %1160 = vmatpush.msra.mxu0 %v3294_v41 }
 0x1bf   :  { %1451 = vmatpush.msrb.mxu2 %v3211_v52  ;;  %v3296_v52 = vld [vmem:[#allocation10 + $0x1a8] sm:$0xff] }
 0x1c0   :  { %1180 = vmatpush.msra.mxu1 %v3296_v52 }
 0x1c1   :  { %1452 = vmatpush.msrb.mxu2 %v3214_v42  ;;  %v3298_v42 = vld [vmem:[#allocation10 + $0x1b8] sm:$0xff] }
 0x1c2   :  { %1220 = vmatpush.msra.mxu3 %v3298_v42 }
 0x1c3   :  { %1453 = vmatpush.msrb.mxu2 %v3217_v11  ;;  %v3303_v11 = vld [vmem:[#allocation10 + $0x180] sm:$0xff] }
 0x1c4   :  { %1161 = vmatpush.msra.mxu0 %v3303_v11 }
 0x1c5   :  { %1454 = vmatpush.msrb.mxu2 %v3221_v12  ;;  %v3305_v12 = vld [vmem:[#allocation10 + $0x188] sm:$0xff] }
 0x1c6   :  { %1181 = vmatpush.msra.mxu1 %v3305_v12 }
 0x1c7   :  { %1455 = vmatpush.msrb.mxu2 %v3224_v17  ;;  %v3307_v17 = vld [vmem:[#allocation10 + $0x198] sm:$0xff] }
 0x1c8   :  { %1221 = vmatpush.msra.mxu3 %v3307_v17 }
 0x1c9   :  { %1456 = vmatpush.msrb.mxu2 %v3227_v19  ;;  %v3312_v19 = vld [vmem:[#allocation10 + $0x160] sm:$0xff] }
 0x1ca   :  { %1162 = vmatpush.msra.mxu0 %v3312_v19 }
 0x1cb   :  { %1457 = vmatpush.msrb.mxu2 %v3230_v29  ;;  %v3314_v29 = vld [vmem:[#allocation10 + $0x168] sm:$0xff] }
 0x1cc   :  { %1182 = vmatpush.msra.mxu1 %v3314_v29 }
 0x1cd   :  { %1458 = vmatpush.msrb.mxu2 %v3234_v25  ;;  %v3316_v25 = vld [vmem:[#allocation10 + $0x178] sm:$0xff] }
 0x1ce   :  { %1222 = vmatpush.msra.mxu3 %v3316_v25  ;;  %1183 = vmatpush.msra.mxu1 %v3323_v10 }
 0x1cf   :  { %1459 = vmatpush.msrb.mxu2 %v3237_v27  ;;  %v3321_v27 = vld [vmem:[#allocation10 + $0x140] sm:$0xff] }
 0x1d0   :  { %3891 = vst [vmem:[#allocation31_spill] sm:$0xff] %v3321_v27  ;;  %1163 = vmatpush.msra.mxu0 %v3321_v27  ;;  %1223 = vmatpush.msra.mxu3 %v3325_v53 }
 0x1d1   :  { %1184 = vmatpush.msra.mxu1 %v3334_v18 }
 0x1d2   :  { %1164 = vmatpush.msra.mxu0 %v3332_v16  ;;  %1224 = vmatpush.msra.mxu3 %v3336_v21 }
 0x1d4   :  { %1165 = vmatpush.msra.mxu0 %v3341_v22 }
 0x1d6   :  { %1166 = vmatpush.msra.mxu0 %v3350_v24 }
 0x1d8   :  { %1167 = vmatpush.msra.mxu0 %v3359_v28 }
 0x1da   :  { %1168 = vmatpush.msra.mxu0 %v3369_v43 }
 0x1dc   :  { %1169 = vmatpush.msra.mxu0 %v3378_v48 }
 0x1de   :  { %1170 = vmatpush.msra.mxu0 %v3387_v6 }
 0x22c   :  { %v929_v56 = vpop.f32.mrf.mxu0  ;;  %v949_v57 = vpop.f32.mrf.mxu1 }
 0x22d   :  { %v992_v13 = vadd.f32 %v929_v56, %v3137_v59  ;;  %v993_v14 = vadd.f32 %v949_v57, %v3140_v60  ;;  %v3343_v59 = vld [vmem:[#allocation10 + $0x108] sm:$0xff]  ;;  %v3345_v60 = vld [vmem:[#allocation10 + $0x118] sm:$0xff]  ;;  %v3396_v57 = vld [vmem:[#allocation10 + $0x40] sm:$0xff] }
 0x22e   :  { %1185 = vmatpush.msra.mxu1 %v3343_v59  ;;  %1225 = vmatpush.msra.mxu3 %v3345_v60  ;;  %v3391_v56 = vld [vmem:[#allocation10 + $0x78] sm:$0xff] }
 0x22f   :  { %2431 = vtanh.f32 %v992_v13  ;;  %v3398_v13 = vld [vmem:[#allocation10 + $0x48] sm:$0xff]  ;;  %1171 = vmatpush.msra.mxu0 %v3396_v57 }
 0x230   :  { %2433 = vtanh.f32 %v993_v14  ;;  %1186 = vmatpush.msra.mxu1 %v3352_v54  ;;  %1226 = vmatpush.msra.mxu3 %v3354_v1  ;;  %v3400_v14 = vld [vmem:[#allocation10 + $0x58] sm:$0xff] }
 0x232   :  { %1187 = vmatpush.msra.mxu1 %v3361_v3  ;;  %1227 = vmatpush.msra.mxu3 %v3363_v30 }
 0x233   :  { %v969_v26 = vpop.f32.mrf.mxu2  ;;  %v989_v5 = vpop.f32.mrf.mxu3 }
 0x234   :  { %v994_v36 = vadd.f32 %v969_v26, %v3034_v31  ;;  %1188 = vmatpush.msra.mxu1 %v3371_v44  ;;  %1228 = vmatpush.msra.mxu3 %v3373_v50 }
 0x235   :  { %v2432_v38 = vpop.eup %2431 }
 0x236   :  { %v2434_v45 = vpop.eup %2433  ;;  %v2355_v47 = vmul.f32 -1.442695, %v2432_v38  ;;  %2435 = vtanh.f32 %v994_v36  ;;  %1189 = vmatpush.msra.mxu1 %v3380_v49  ;;  %1229 = vmatpush.msra.mxu3 %v3382_v32  ;;  %v995_v36 = vadd.f32 %v989_v5, %v3162_v15  ;;  %v3417_v5 = vld [vmem:[#allocation10] sm:$0xff] }
 0x237   :  { %v2356_v31 = vmul.f32 -1.442695, %v2434_v45  ;;  %v3406_v45 = vld [vmem:[#allocation10 + $0x20] sm:$0xff] }
 0x238   :  { %2437 = vpow2.f32 %v2355_v47  ;;  %1190 = vmatpush.msra.mxu1 %v3389_v7  ;;  %1230 = vmatpush.msra.mxu3 %v3391_v56  ;;  %v3408_v47 = vld [vmem:[#allocation10 + $0x28] sm:$0xff] }
 0x239   :  { %2439 = vpow2.f32 %v2356_v31  ;;  %v3410_v31 = vld [vmem:[#allocation10 + $0x38] sm:$0xff]  ;;  %1172 = vmatpush.msra.mxu0 %v3406_v45 }
 0x23a   :  { %1191 = vmatpush.msra.mxu1 %v3398_v13  ;;  %1231 = vmatpush.msra.mxu3 %v3400_v14 }
 0x23b   :  { %1173 = vmatpush.msra.mxu0 %v3417_v5 }
 0x23c   :  { %v2436_v26 = vpop.eup %2435  ;;  %1192 = vmatpush.msra.mxu1 %v3408_v47  ;;  %1232 = vmatpush.msra.mxu3 %v3410_v31 }
 0x23d   :  { %v2357_v38 = vmul.f32 -1.442695, %v2436_v26  ;;  %v3419_v26 = vld [vmem:[#allocation10 + $0x8] sm:$0xff]  ;;  %1404 = vmatpush.msrb.mxu0 %v3276_v51 }
 0x23e   :  { %v2438_v39 = vpop.eup %2437  ;;  %1193 = vmatpush.msra.mxu1 %v3419_v26  ;;  %1233 = vmatpush.msra.mxu3 %v3421_v37 }
 0x23f   :  { %v2440_v55 = vpop.eup %2439  ;;  %v3414_v15 = vadd.f32 1.0, %v2438_v39  ;;  %2441 = vpow2.f32 %v2357_v38  ;;  %1405 = vmatpush.msrb.mxu0 %v3285_v62 }
 0x240   :  { %v3423_v23 = vadd.f32 1.0, %v2440_v55  ;;  %2443 = vtanh.f32 %v995_v36  ;;  %1424 = vmatpush.msrb.mxu1 %v3278_v58  ;;  %1464 = vmatpush.msrb.mxu3 %v3280_v61 }
 0x241   :  { %2445 = vrcp.f32 %v3414_v15  ;;  %1406 = vmatpush.msrb.mxu0 %v3294_v41  ;;  %v1023_v9 = vand.u32 2147483648, %v3414_v15  ;;  %v1021_v33 = vand.u32 2147483647, %v3414_v15  ;;  %vm1017_vm11 = vweird.f32 %v3414_v15 }
 0x242   :  { %2447 = vrcp.f32 %v3423_v23  ;;  %1425 = vmatpush.msrb.mxu1 %v3287_v2  ;;  %1465 = vmatpush.msrb.mxu3 %v3289_v4  ;;  %v1038_v0 = vand.u32 2147483648, %v3423_v23  ;;  %v1036_v63 = vand.u32 2147483647, %v3423_v23  ;;  %vm1032_vm13 = vweird.f32 %v3423_v23 }
 0x243   :  { %1407 = vmatpush.msrb.mxu0 %v3303_v11  ;;  %vm1022_vm14 = vcmp.eq.f32.partialorder %v1021_v33, 8.507059e+37 }
 0x244   :  { %1426 = vmatpush.msrb.mxu1 %v3296_v52  ;;  %1466 = vmatpush.msrb.mxu3 %v3298_v42  ;;  %vm1037_vm0 = vcmp.eq.f32.partialorder %v1036_v63, 8.507059e+37 }
 0x245   :  { %v2442_v39 = vpop.eup %2441  ;;  %1408 = vmatpush.msrb.mxu0 %v3312_v19 }
 0x246   :  { %v2444_v55 = vpop.eup %2443  ;;  %v3437_v36 = vadd.f32 1.0, %v2442_v39  ;;  %1427 = vmatpush.msrb.mxu1 %v3305_v12  ;;  %1467 = vmatpush.msrb.mxu3 %v3307_v17 }
 0x247   :  { %v2446_v38 = vpop.eup %2445  ;;  %1409 = vmatpush.msrb.mxu0 %v3321_v27 }
 0x248   :  { %v2448_v20 = vpop.eup %2447  ;;  %v1013_v46 = vmul.f32 %v2446_v38, %v3414_v15  ;;  %2449 = vrcp.f32 %v3437_v36  ;;  %1428 = vmatpush.msrb.mxu1 %v3314_v29  ;;  %1468 = vmatpush.msrb.mxu3 %v3316_v25  ;;  %vm1018_vm9 = vweird.f32 %v2446_v38  ;;  %vm1047_vm2 = vweird.f32 %v3437_v36 }
 0x249   :  { %v1028_v35 = vmul.f32 %v2448_v20, %v3423_v23  ;;  %2451 = vtanh.f32 %v2444_v55  ;;  %vm1033_vm10 = vweird.f32 %v2448_v20  ;;  %1410 = vmatpush.msrb.mxu0 %v3332_v16  ;;  %vm1019_vm12 = vmor %vm1017_vm11, %vm1018_vm9  ;;  %v1039_v16 = vor.u32 1.1754944e-38, %v1038_v0 }
 0x24a   :  { %v1014_v39 = vsub.f32 1.0, %v1013_v46  ;;  %1429 = vmatpush.msrb.mxu1 %v3323_v10  ;;  %1469 = vmatpush.msrb.mxu3 %v3325_v53  ;;  %vm1034_vm15 = vmor %vm1032_vm13, %vm1033_vm10  ;;  %2453 = vtanh.f32 %v3252_v40  ;;  %v1053_v23 = vand.u32 2147483648, %v3437_v36 }
 0x24b   :  { %v1029_v8 = vsub.f32 1.0, %v1028_v35  ;;  %1411 = vmatpush.msrb.mxu0 %v3341_v22 }
 0x24c   :  { %v1015_v34 = vmul.f32 %v2446_v38, %v1014_v39  ;;  %1430 = vmatpush.msrb.mxu1 %v3334_v18  ;;  %1470 = vmatpush.msrb.mxu3 %v3336_v21  ;;  %v1024_v39 = vor.u32 1.1754944e-38, %v1023_v9 }
 0x24d   :  { %v1030_v46 = vmul.f32 %v2448_v20, %v1029_v8  ;;  %1412 = vmatpush.msrb.mxu0 %v3350_v24 }
 0x24e   :  { %v2450_v35 = vpop.eup %2449  ;;  %v1016_v55 = vadd.f32 %v2446_v38, %v1015_v34  ;;  %1431 = vmatpush.msrb.mxu1 %v3343_v59  ;;  %1471 = vmatpush.msrb.mxu3 %v3345_v60 }
 0x24f   :  { %v1043_v10 = vmul.f32 %v2450_v35, %v3437_v36  ;;  %v1031_v27 = vadd.f32 %v2448_v20, %v1030_v46  ;;  %v2452_v34 = vpop.eup %2451  ;;  %vm1048_vm1 = vweird.f32 %v2450_v35  ;;  %1413 = vmatpush.msrb.mxu0 %v3359_v28 }
 0x250   :  { %v1020_v8 = vsel %vm1019_vm12, %v2446_v38, %v1016_v55  ;;  %1432 = vmatpush.msrb.mxu1 %v3352_v54  ;;  %1472 = vmatpush.msrb.mxu3 %v3354_v1  ;;  %vm1049_vm3 = vmor %vm1047_vm2, %vm1048_vm1 }
 0x251   :  { %v1044_v15 = vsub.f32 1.0, %v1043_v10  ;;  %v1025_v21 = vsel %vm1022_vm14, %v1024_v39, %v1020_v8  ;;  %v1035_v9 = vsel %vm1034_vm15, %v2448_v20, %v1031_v27  ;;  %v1051_v10 = vand.u32 2147483647, %v3437_v36  ;;  %1414 = vmatpush.msrb.mxu0 %v3369_v43 }
 0x252   :  { %v1040_v38 = vsel %vm1037_vm0, %v1039_v16, %v1035_v9  ;;  %v1059_v33 = vmul.f32 %v1025_v21, %v3252_v40  ;;  %1433 = vmatpush.msrb.mxu1 %v3361_v3  ;;  %1473 = vmatpush.msrb.mxu3 %v3363_v30  ;;  %v1054_v40 = vor.u32 1.1754944e-38, %v1053_v23  ;;  %v2454_v16 = vpop.eup %2453 }
 0x253   :  { %v1045_v0 = vmul.f32 %v2450_v35, %v1044_v15  ;;  %v1060_v46 = vmul.f32 %v2452_v34, %v1040_v38  ;;  %vm1052_vm4 = vcmp.eq.f32.partialorder %v1051_v10, 8.507059e+37  ;;  %1415 = vmatpush.msrb.mxu0 %v3378_v48 }
 0x254   :  { %1434 = vmatpush.msrb.mxu1 %v3371_v44  ;;  %1474 = vmatpush.msrb.mxu3 %v3373_v50 }
 0x255   :  { %v1046_v63 = vadd.f32 %v2450_v35, %v1045_v0  ;;  %v3478_v20 = vadd.f32 %v1060_v46, %v1059_v33  ;;  %1416 = vmatpush.msrb.mxu0 %v3387_v6 }
 0x256   :  { %1435 = vmatpush.msrb.mxu1 %v3380_v49  ;;  %1475 = vmatpush.msrb.mxu3 %v3382_v32 }
 0x257   :  { %v1050_v27 = vsel %vm1049_vm3, %v2450_v35, %v1046_v63  ;;  %1417 = vmatpush.msrb.mxu0 %v3396_v57 }
 0x258   :  { %v1055_v21 = vsel %vm1052_vm4, %v1054_v40, %v1050_v27  ;;  %1436 = vmatpush.msrb.mxu1 %v3389_v7  ;;  %1476 = vmatpush.msrb.mxu3 %v3391_v56 }
 0x259   :  { %v1064_v36 = vmul.f32 %v2454_v16, %v1055_v21  ;;  %1418 = vmatpush.msrb.mxu0 %v3406_v45 }
 0x25a   :  { %1437 = vmatpush.msrb.mxu1 %v3398_v13  ;;  %1477 = vmatpush.msrb.mxu3 %v3400_v14 }
 0x25b   :  { %v1068_v55 = vrot.slane %v1064_v36, 1  ;;  %v1069_v39 = vrot.slane %v1064_v36, 2  ;;  %v1070_v8 = vrot.slane %v1064_v36, 3  ;;  %1082 = vst [vmem:[#allocation13 + $0x3] sm:$0x1] %v1064_v36  ;;  %1174 = vmatmul.f32.vlgmr.msra.gmra.mxu0 %v1064_v36  ;;  %1194 = vmatmul.f32.vlgmr.msra.gmra.mxu1 %v1064_v36  ;;  %v1071_v35 = vrot.slane %v1064_v36, 4 }
 0x25c   :  { %1214 = vmatmul.f32.vlgmr.msra.gmra.mxu2 %v1064_v36  ;;  %1234 = vmatmul.f32.vlgmr.msra.gmra.mxu3 %v1064_v36  ;;  %v1072_v34 = vrot.slane %v1064_v36, 5  ;;  %v1073_v15 = vrot.slane %v1064_v36, 6  ;;  %v1074_v9 = vrot.slane %v1064_v36, 7 }
 0x25d   :  { %1083 = vst [vmem:[#allocation13 + $0xb] sm:$0x1] %v1068_v55  ;;  %1438 = vmatpush.msrb.mxu1 %v3408_v47  ;;  %1478 = vmatpush.msrb.mxu3 %v3410_v31 }
 0x25e   :  { %1084 = vst [vmem:[#allocation13 + $0x13] sm:$0x1] %v1069_v39  ;;  %1419 = vmatpush.msrb.mxu0 %v3417_v5 }
 0x25f   :  { %1085 = vst [vmem:[#allocation13 + $0x1b] sm:$0x1] %v1070_v8  ;;  %1439 = vmatpush.msrb.mxu1 %v3419_v26  ;;  %1479 = vmatpush.msrb.mxu3 %v3421_v37 }
 0x260   :  { %1086 = vst [vmem:[#allocation13 + $0x23] sm:$0x1] %v1071_v35  ;;  %1650 = vmatpush.msra.mxu0 %v3276_v51  ;;  %v3895_v51 = vld [vmem:[#allocation31_spill] sm:$0xff] }
 0x261   :  { %1087 = vst [vmem:[#allocation13 + $0x2b] sm:$0x1] %v1072_v34  ;;  %1670 = vmatpush.msra.mxu1 %v3278_v58  ;;  %1710 = vmatpush.msra.mxu3 %v3280_v61  ;;  %v3896_v58 = vld [vmem:[#allocation32_spill] sm:$0xff]  ;;  %v3897_v61 = vld [vmem:[#allocation33_spill] sm:$0xff] }
 0x262   :  { %1088 = vst [vmem:[#allocation13 + $0x33] sm:$0x1] %v1073_v15  ;;  %1651 = vmatpush.msra.mxu0 %v3285_v62  ;;  %v3898_v62 = vld [vmem:[#allocation34_spill] sm:$0xff] }
 0x263   :  { %1089 = vst [vmem:[#allocation13 + $0x3b] sm:$0x1] %v1074_v9  ;;  %1671 = vmatpush.msra.mxu1 %v3287_v2  ;;  %1711 = vmatpush.msra.mxu3 %v3289_v4 }
 0x264   :  { %1652 = vmatpush.msra.mxu0 %v3294_v41  ;;  %v3899_v41 = vld [vmem:[#allocation22_spill] sm:$0xff] }
 0x265   :  { %1672 = vmatpush.msra.mxu1 %v3296_v52  ;;  %1712 = vmatpush.msra.mxu3 %v3298_v42  ;;  %v3900_v42 = vld [vmem:[#allocation23_spill] sm:$0xff] }
 0x266   :  { %1653 = vmatpush.msra.mxu0 %v3303_v11 }
 0x267   :  { %1673 = vmatpush.msra.mxu1 %v3305_v12  ;;  %1713 = vmatpush.msra.mxu3 %v3307_v17  ;;  %v3901_v17 = vld [vmem:[#allocation18_spill] sm:$0xff] }
 0x268   :  { %1654 = vmatpush.msra.mxu0 %v3312_v19 }
 0x269   :  { %1674 = vmatpush.msra.mxu1 %v3314_v29  ;;  %1714 = vmatpush.msra.mxu3 %v3316_v25 }
 0x26a   :  { %1655 = vmatpush.msra.mxu0 %v3895_v51 }
 0x26b   :  { %1675 = vmatpush.msra.mxu1 %v3896_v58  ;;  %1715 = vmatpush.msra.mxu3 %v3325_v53 }
 0x26c   :  { %1656 = vmatpush.msra.mxu0 %v3897_v61 }
 0x26d   :  { %1676 = vmatpush.msra.mxu1 %v3334_v18  ;;  %1716 = vmatpush.msra.mxu3 %v3898_v62 }
 0x26e   :  { %1657 = vmatpush.msra.mxu0 %v3341_v22 }
 0x26f   :  { %1677 = vmatpush.msra.mxu1 %v3343_v59  ;;  %1717 = vmatpush.msra.mxu3 %v3345_v60  ;;  %v3902_v59 = vld [vmem:[#allocation28_spill] sm:$0xff] }
 0x270   :  { %1658 = vmatpush.msra.mxu0 %v3350_v24 }
 0x271   :  { %1678 = vmatpush.msra.mxu1 %v3352_v54  ;;  %1718 = vmatpush.msra.mxu3 %v3354_v1 }
 0x272   :  { %1659 = vmatpush.msra.mxu0 %v3359_v28 }
 0x273   :  { %1679 = vmatpush.msra.mxu1 %v3361_v3  ;;  %1719 = vmatpush.msra.mxu3 %v3363_v30 }
 0x274   :  { %1660 = vmatpush.msra.mxu0 %v3369_v43 }
 0x275   :  { %1680 = vmatpush.msra.mxu1 %v3371_v44  ;;  %1720 = vmatpush.msra.mxu3 %v3373_v50 }
 0x276   :  { %1661 = vmatpush.msra.mxu0 %v3378_v48 }
 0x277   :  { %1681 = vmatpush.msra.mxu1 %v3380_v49  ;;  %1721 = vmatpush.msra.mxu3 %v3382_v32 }
 0x278   :  { %1662 = vmatpush.msra.mxu0 %v3387_v6 }
 0x279   :  { %1682 = vmatpush.msra.mxu1 %v3389_v7  ;;  %1722 = vmatpush.msra.mxu3 %v3391_v56 }
 0x27a   :  { %1663 = vmatpush.msra.mxu0 %v3396_v57 }
 0x27b   :  { %1683 = vmatpush.msra.mxu1 %v3398_v13  ;;  %1723 = vmatpush.msra.mxu3 %v3400_v14 }
 0x27c   :  { %1664 = vmatpush.msra.mxu0 %v3406_v45 }
 0x27d   :  { %1684 = vmatpush.msra.mxu1 %v3408_v47  ;;  %1724 = vmatpush.msra.mxu3 %v3410_v31 }
 0x27e   :  { %1665 = vmatpush.msra.mxu0 %v3417_v5 }
 0x27f   :  { %1685 = vmatpush.msra.mxu1 %v3419_v26  ;;  %1725 = vmatpush.msra.mxu3 %v3421_v37 }
 0x2d8   :  { %v1175_v2 = vpop.f32.mrf.mxu0  ;;  %v1195_v4 = vpop.f32.mrf.mxu1 }
 0x2d9   :  { %v1238_v52 = vadd.f32 %v1175_v2, %v3899_v41  ;;  %v1239_v11 = vadd.f32 %v1195_v4, %v3900_v42  ;;  %v3554_v42 = vld [vmem:[#allocation10 + $0x1f0] sm:$0xff] }
 0x2da   :  { %1690 = vmatpush.msra.mxu2 %v3554_v42 }
 0x2db   :  { %2455 = vtanh.f32 %v1238_v52 }
 0x2dc   :  { %2457 = vtanh.f32 %v1239_v11  ;;  %v3557_v11 = vld [vmem:[#allocation10 + $0x1d0] sm:$0xff] }
 0x2dd   :  { %1691 = vmatpush.msra.mxu2 %v3557_v11 }
 0x2df   :  { %v1215_v12 = vpop.f32.mrf.mxu2  ;;  %v1235_v22 = vpop.f32.mrf.mxu3 }
 0x2e0   :  { %v1240_v19 = vadd.f32 %v1215_v12, %v3901_v17  ;;  %v1241_v60 = vadd.f32 %v1235_v22, %v3902_v59  ;;  %v3560_v12 = vld [vmem:[#allocation10 + $0x1b0] sm:$0xff] }
 0x2e1   :  { %v2456_v29 = vpop.eup %2455  ;;  %1692 = vmatpush.msra.mxu2 %v3560_v12  ;;  %v3563_v17 = vld [vmem:[#allocation10 + $0x190] sm:$0xff] }
 0x2e2   :  { %v2458_v25 = vpop.eup %2457  ;;  %v2358_v53 = vmul.f32 -1.442695, %v2456_v29  ;;  %2459 = vtanh.f32 %v1240_v19  ;;  %v3566_v19 = vld [vmem:[#allocation10 + $0x170] sm:$0xff] }
 0x2e3   :  { %v2359_v18 = vmul.f32 -1.442695, %v2458_v25  ;;  %1693 = vmatpush.msra.mxu2 %v3563_v17  ;;  %v3569_v29 = vld [vmem:[#allocation10 + $0x150] sm:$0xff] }
 0x2e4   :  { %2461 = vpow2.f32 %v2358_v53 }
 0x2e5   :  { %2463 = vpow2.f32 %v2359_v18  ;;  %1694 = vmatpush.msra.mxu2 %v3566_v19  ;;  %v3903_v18 = vld [vmem:[#allocation24_spill] sm:$0xff] }
 0x2e7   :  { %1695 = vmatpush.msra.mxu2 %v3569_v29 }
 0x2e8   :  { %v2460_v37 = vpop.eup %2459 }
 0x2e9   :  { %v2360_v24 = vmul.f32 -1.442695, %v2460_v37  ;;  %v3904_v37 = vld [vmem:[#allocation25_spill] sm:$0xff] }
 0x2ea   :  { %v2462_v54 = vpop.eup %2461 }
 0x2eb   :  { %v2464_v1 = vpop.eup %2463  ;;  %v1255_v28 = vadd.f32 1.0, %v2462_v54  ;;  %2465 = vpow2.f32 %v2360_v24  ;;  %v3577_v24 = vld [vmem:[#allocation10 + $0x110] sm:$0xff] }
 0x2ec   :  { %v1256_v3 = vadd.f32 1.0, %v2464_v1  ;;  %2467 = vtanh.f32 %v1241_v60  ;;  %v3574_v60 = vld [vmem:[#allocation10 + $0x130] sm:$0xff] }
 0x2ed   :  { %2469 = vrcp.f32 %v1255_v28  ;;  %v1269_v7 = vand.u32 2147483648, %v1255_v28  ;;  %v1267_v13 = vand.u32 2147483647, %v1255_v28  ;;  %vm1263_vm7 = vweird.f32 %v1255_v28  ;;  %1696 = vmatpush.msra.mxu2 %v3574_v60  ;;  %v3580_v54 = vld [vmem:[#allocation10 + $0xf0] sm:$0xff] }
 0x2ee   :  { %2471 = vrcp.f32 %v1256_v3  ;;  %v1284_v14 = vand.u32 2147483648, %v1256_v3  ;;  %v1282_v47 = vand.u32 2147483647, %v1256_v3  ;;  %vm1278_vm9 = vweird.f32 %v1256_v3 }
 0x2ef   :  { %v1270_v26 = vor.u32 1.1754944e-38, %v1269_v7  ;;  %vm1268_vm10 = vcmp.eq.f32.partialorder %v1267_v13, 8.507059e+37  ;;  %1697 = vmatpush.msra.mxu2 %v3577_v24  ;;  %v3593_v7 = vld [vmem:[#allocation10 + $0x70] sm:$0xff]  ;;  %v3906_v13 = vld [vmem:[#allocation29_spill] sm:$0xff] }
 0x2f0   :  { %v1285_v0 = vor.u32 1.1754944e-38, %v1284_v14  ;;  %vm1283_vm12 = vcmp.eq.f32.partialorder %v1282_v47, 8.507059e+37  ;;  %v3600_v47 = vld [vmem:[#allocation10 + $0x30] sm:$0xff] }
 0x2f1   :  { %v2466_v30 = vpop.eup %2465  ;;  %1698 = vmatpush.msra.mxu2 %v3580_v54 }
 0x2f2   :  { %v2468_v43 = vpop.eup %2467  ;;  %v1257_v44 = vadd.f32 1.0, %v2466_v30 }
 0x2f3   :  { %v2470_v50 = vpop.eup %2469 }
 0x2f4   :  { %v2472_v48 = vpop.eup %2471  ;;  %v1259_v49 = vmul.f32 %v2470_v50, %v1255_v28  ;;  %2473 = vrcp.f32 %v1257_v44  ;;  %vm1264_vm5 = vweird.f32 %v2470_v50  ;;  %v1299_v27 = vand.u32 2147483648, %v1257_v44  ;;  %v3583_v28 = vld [vmem:[#allocation10 + $0xd0] sm:$0xff] }
 0x2f5   :  { %v1274_v32 = vmul.f32 %v2472_v48, %v1256_v3  ;;  %2475 = vtanh.f32 %v2468_v43  ;;  %vm1279_vm6 = vweird.f32 %v2472_v48  ;;  %vm1265_vm8 = vmor %vm1263_vm7, %vm1264_vm5  ;;  %v1297_v55 = vand.u32 2147483647, %v1257_v44  ;;  %v3905_v3 = vld [vmem:[#allocation19_spill] sm:$0xff]  ;;  %1699 = vmatpush.msra.mxu2 %v3583_v28 }
 0x2f6   :  { %v1260_v6 = vsub.f32 1.0, %v1259_v49  ;;  %vm1280_vm11 = vmor %vm1278_vm9, %vm1279_vm6  ;;  %2477 = vtanh.f32 %v3478_v20  ;;  %vm1293_vm14 = vweird.f32 %v1257_v44  ;;  %v1300_v34 = vor.u32 1.1754944e-38, %v1299_v27 }
 0x2f7   :  { %v1275_v56 = vsub.f32 1.0, %v1274_v32  ;;  %vm1298_vm0 = vcmp.eq.f32.partialorder %v1297_v55, 8.507059e+37  ;;  %v3590_v32 = vld [vmem:[#allocation10 + $0x90] sm:$0xff] }
 0x2f8   :  { %v1261_v57 = vmul.f32 %v2470_v50, %v1260_v6 }
 0x2f9   :  { %v1276_v45 = vmul.f32 %v2472_v48, %v1275_v56  ;;  %v3596_v56 = vld [vmem:[#allocation10 + $0x50] sm:$0xff] }
 0x2fa   :  { %v2474_v31 = vpop.eup %2473  ;;  %v1262_v5 = vadd.f32 %v2470_v50, %v1261_v57 }
 0x2fb   :  { %v1289_v23 = vmul.f32 %v2474_v31, %v1257_v44  ;;  %v1277_v38 = vadd.f32 %v2472_v48, %v1276_v45  ;;  %v2476_v10 = vpop.eup %2475  ;;  %vm1294_vm13 = vweird.f32 %v2474_v31  ;;  %v3587_v44 = vld [vmem:[#allocation10 + $0xb0] sm:$0xff] }
 0x2fc   :  { %v1266_v33 = vsel %vm1265_vm8, %v2470_v50, %v1262_v5  ;;  %vm1295_vm15 = vmor %vm1293_vm14, %vm1294_vm13  ;;  %v2478_v9 = vpop.eup %2477  ;;  %1700 = vmatpush.msra.mxu2 %v3587_v44 }
 0x2fd   :  { %v1290_v46 = vsub.f32 1.0, %v1289_v23  ;;  %v1271_v63 = vsel %vm1268_vm10, %v1270_v26, %v1266_v33  ;;  %v1281_v40 = vsel %vm1280_vm11, %v2472_v48, %v1277_v38  ;;  %v3603_v23 = vld [vmem:[#allocation10 + $0x10] sm:$0xff] }
 0x2fe   :  { %v1286_v16 = vsel %vm1283_vm12, %v1285_v0, %v1281_v40  ;;  %v1305_v21 = vmul.f32 %v1271_v63, %v3478_v20  ;;  %1701 = vmatpush.msra.mxu2 %v3590_v32 }
 0x2ff   :  { %v1291_v36 = vmul.f32 %v2474_v31, %v1290_v46  ;;  %v1306_v39 = vmul.f32 %v2476_v10, %v1286_v16 }
 0x300   :  { %1702 = vmatpush.msra.mxu2 %v3593_v7 }
 0x301   :  { %v1292_v8 = vadd.f32 %v2474_v31, %v1291_v36  ;;  %v3552_v35 = vadd.f32 %v1306_v39, %v1305_v21 }
 0x302   :  { %1703 = vmatpush.msra.mxu2 %v3596_v56 }
 0x303   :  { %v1296_v15 = vsel %vm1295_vm15, %v2474_v31, %v1292_v8 }
 0x304   :  { %v1301_v51 = vsel %vm1298_vm0, %v1300_v34, %v1296_v15  ;;  %1704 = vmatpush.msra.mxu2 %v3600_v47 }
 0x305   :  { %v1310_v58 = vmul.f32 %v2478_v9, %v1301_v51 }
 0x306   :  { %1705 = vmatpush.msra.mxu2 %v3603_v23 }
 0x307   :  { %v1314_v61 = vrot.slane %v1310_v58, 1  ;;  %v1315_v62 = vrot.slane %v1310_v58, 2  ;;  %v1316_v2 = vrot.slane %v1310_v58, 3  ;;  %1328 = vst [vmem:[#allocation13 + $0x4] sm:$0x1] %v1310_v58  ;;  %1420 = vmatmul.f32.vlgmr.msrb.gmra.mxu0 %v1310_v58  ;;  %1440 = vmatmul.f32.vlgmr.msrb.gmra.mxu1 %v1310_v58  ;;  %v1317_v20 = vrot.slane %v1310_v58, 4 }
 0x308   :  { %1460 = vmatmul.f32.vlgmr.msrb.gmra.mxu2 %v1310_v58  ;;  %1480 = vmatmul.f32.vlgmr.msrb.gmra.mxu3 %v1310_v58  ;;  %v1318_v4 = vrot.slane %v1310_v58, 5  ;;  %v1319_v41 = vrot.slane %v1310_v58, 6  ;;  %v1320_v52 = vrot.slane %v1310_v58, 7 }
 0x309   :  { %1329 = vst [vmem:[#allocation13 + $0xc] sm:$0x1] %v1314_v61  ;;  %1936 = vmatpush.msrb.mxu2 %v3554_v42 }
 0x30a   :  { %1330 = vst [vmem:[#allocation13 + $0x14] sm:$0x1] %v1315_v62 }
 0x30b   :  { %1331 = vst [vmem:[#allocation13 + $0x1c] sm:$0x1] %v1316_v2  ;;  %1937 = vmatpush.msrb.mxu2 %v3557_v11 }
 0x30c   :  { %1332 = vst [vmem:[#allocation13 + $0x24] sm:$0x1] %v1317_v20 }
 0x30d   :  { %1333 = vst [vmem:[#allocation13 + $0x2c] sm:$0x1] %v1318_v4  ;;  %1938 = vmatpush.msrb.mxu2 %v3560_v12 }
 0x30e   :  { %1334 = vst [vmem:[#allocation13 + $0x34] sm:$0x1] %v1319_v41 }
 0x30f   :  { %1335 = vst [vmem:[#allocation13 + $0x3c] sm:$0x1] %v1320_v52  ;;  %1939 = vmatpush.msrb.mxu2 %v3563_v17 }
 0x311   :  { %1940 = vmatpush.msrb.mxu2 %v3566_v19 }
 0x313   :  { %1941 = vmatpush.msrb.mxu2 %v3569_v29 }
 0x315   :  { %1942 = vmatpush.msrb.mxu2 %v3574_v60 }
 0x317   :  { %1943 = vmatpush.msrb.mxu2 %v3577_v24 }
 0x319   :  { %1944 = vmatpush.msrb.mxu2 %v3580_v54 }
 0x31b   :  { %1945 = vmatpush.msrb.mxu2 %v3583_v28 }
 0x31d   :  { %1946 = vmatpush.msrb.mxu2 %v3587_v44 }
 0x31f   :  { %1947 = vmatpush.msrb.mxu2 %v3590_v32 }
 0x321   :  { %1948 = vmatpush.msrb.mxu2 %v3593_v7 }
 0x323   :  { %1949 = vmatpush.msrb.mxu2 %v3596_v56 }
 0x325   :  { %1950 = vmatpush.msrb.mxu2 %v3600_v47 }
 0x327   :  { %1951 = vmatpush.msrb.mxu2 %v3603_v23 }
 0x384   :  { %v1421_v25 = vpop.f32.mrf.mxu0  ;;  %v1441_v53 = vpop.f32.mrf.mxu1 }
 0x385   :  { %v1484_v22 = vadd.f32 %v1421_v25, %v3903_v18  ;;  %v1485_v59 = vadd.f32 %v1441_v53, %v3904_v37 }
 0x387   :  { %2479 = vtanh.f32 %v1484_v22 }
 0x388   :  { %2481 = vtanh.f32 %v1485_v59 }
 0x38b   :  { %v1461_v1 = vpop.f32.mrf.mxu2  ;;  %v1481_v6 = vpop.f32.mrf.mxu3 }
 0x38c   :  { %v1486_v30 = vadd.f32 %v1461_v1, %v3905_v3  ;;  %v1487_v14 = vadd.f32 %v1481_v6, %v3906_v13 }
 0x38d   :  { %v2480_v43 = vpop.eup %2479 }
 0x38e   :  { %v2482_v50 = vpop.eup %2481  ;;  %v2361_v48 = vmul.f32 -1.442695, %v2480_v43  ;;  %2483 = vtanh.f32 %v1486_v30 }
 0x38f   :  { %v2362_v49 = vmul.f32 -1.442695, %v2482_v50 }
 0x390   :  { %2485 = vpow2.f32 %v2361_v48 }
 0x391   :  { %2487 = vpow2.f32 %v2362_v49 }
 0x394   :  { %v2484_v57 = vpop.eup %2483 }
 0x395   :  { %v2363_v45 = vmul.f32 -1.442695, %v2484_v57 }
 0x396   :  { %v2486_v31 = vpop.eup %2485 }
 0x397   :  { %v2488_v5 = vpop.eup %2487  ;;  %v1501_v26 = vadd.f32 1.0, %v2486_v31  ;;  %2489 = vpow2.f32 %v2363_v45 }
 0x398   :  { %v1502_v38 = vadd.f32 1.0, %v2488_v5  ;;  %2491 = vtanh.f32 %v1487_v14 }
 0x399   :  { %2493 = vrcp.f32 %v1501_v26  ;;  %v1515_v21 = vand.u32 2147483648, %v1501_v26  ;;  %v1513_v39 = vand.u32 2147483647, %v1501_v26  ;;  %vm1509_vm3 = vweird.f32 %v1501_v26 }
 0x39a   :  { %2495 = vrcp.f32 %v1502_v38  ;;  %v1530_v8 = vand.u32 2147483648, %v1502_v38  ;;  %v1528_v15 = vand.u32 2147483647, %v1502_v38  ;;  %vm1524_vm5 = vweird.f32 %v1502_v38 }
 0x39b   :  { %v1516_v58 = vor.u32 1.1754944e-38, %v1515_v21  ;;  %vm1514_vm6 = vcmp.eq.f32.partialorder %v1513_v39, 8.507059e+37  ;;  %v3702_v21 = vld [vmem:[#allocation10 + $0x138] sm:$0xff] }
 0x39c   :  { %v1531_v20 = vor.u32 1.1754944e-38, %v1530_v8  ;;  %vm1529_vm8 = vcmp.eq.f32.partialorder %v1528_v15, 8.507059e+37  ;;  %v3711_v39 = vld [vmem:[#allocation10 + $0x118] sm:$0xff]  ;;  %v3716_v8 = vld [vmem:[#allocation10 + $0xe0] sm:$0xff] }
 0x39d   :  { %v2490_v33 = vpop.eup %2489  ;;  %v3720_v15 = vld [vmem:[#allocation10 + $0xf8] sm:$0xff] }
 0x39e   :  { %v2492_v0 = vpop.eup %2491  ;;  %v1503_v10 = vadd.f32 1.0, %v2490_v33 }
 0x39f   :  { %v2494_v46 = vpop.eup %2493 }
 0x3a0   :  { %v2496_v63 = vpop.eup %2495  ;;  %v1505_v40 = vmul.f32 %v2494_v46, %v1501_v26  ;;  %2497 = vrcp.f32 %v1503_v10  ;;  %vm1510_vm1 = vweird.f32 %v2494_v46  ;;  %v1545_v53 = vand.u32 2147483648, %v1503_v10  ;;  %v3687_v26 = vld [vmem:[#allocation10 + $0x140] sm:$0xff] }
 0x3a1   :  { %v1520_v27 = vmul.f32 %v2496_v63, %v1502_v38  ;;  %2499 = vtanh.f32 %v2492_v0  ;;  %vm1525_vm2 = vweird.f32 %v2496_v63  ;;  %vm1511_vm4 = vmor %vm1509_vm3, %vm1510_vm1  ;;  %v1543_v59 = vand.u32 2147483647, %v1503_v10  ;;  %v3691_v38 = vld [vmem:[#allocation10 + $0x158] sm:$0xff] }
 0x3a2   :  { %v1506_v16 = vsub.f32 1.0, %v1505_v40  ;;  %vm1526_vm7 = vmor %vm1524_vm5, %vm1525_vm2  ;;  %2501 = vtanh.f32 %v3552_v35  ;;  %vm1539_vm10 = vweird.f32 %v1503_v10  ;;  %v1546_v43 = vor.u32 1.1754944e-38, %v1545_v53 }
 0x3a3   :  { %v1521_v36 = vsub.f32 1.0, %v1520_v27  ;;  %vm1544_vm12 = vcmp.eq.f32.partialorder %v1543_v59, 8.507059e+37  ;;  %v3698_v27 = vld [vmem:[#allocation10 + $0x120] sm:$0xff]  ;;  %v3748_v59 = vld [vmem:[#allocation10 + $0x98] sm:$0xff] }
 0x3a4   :  { %v1507_v55 = vmul.f32 %v2494_v46, %v1506_v16  ;;  %v3700_v16 = vld [vmem:[#allocation10 + $0x128] sm:$0xff] }
 0x3a5   :  { %v1522_v34 = vmul.f32 %v2496_v63, %v1521_v36  ;;  %v3707_v36 = vld [vmem:[#allocation10 + $0x100] sm:$0xff] }
 0x3a6   :  { %v2498_v9 = vpop.eup %2497  ;;  %v1508_v51 = vadd.f32 %v2494_v46, %v1507_v55  ;;  %v3709_v55 = vld [vmem:[#allocation10 + $0x108] sm:$0xff] }
 0x3a7   :  { %v1535_v61 = vmul.f32 %v2498_v9, %v1503_v10  ;;  %v1523_v62 = vadd.f32 %v2496_v63, %v1522_v34  ;;  %v2500_v4 = vpop.eup %2499  ;;  %vm1540_vm9 = vweird.f32 %v2498_v9  ;;  %v3907_v10 = vld [vmem:[#allocation26_spill] sm:$0xff] }
 0x3a8   :  { %v1512_v2 = vsel %vm1511_vm4, %v2494_v46, %v1508_v51  ;;  %vm1541_vm11 = vmor %vm1539_vm10, %vm1540_vm9  ;;  %v2502_v48 = vpop.eup %2501  ;;  %v3718_v34 = vld [vmem:[#allocation10 + $0xe8] sm:$0xff]  ;;  %v3725_v51 = vld [vmem:[#allocation10 + $0xc0] sm:$0xff] }
 0x3a9   :  { %v1536_v41 = vsub.f32 1.0, %v1535_v61  ;;  %v1517_v52 = vsel %vm1514_vm6, %v1516_v58, %v1512_v2  ;;  %v1527_v25 = vsel %vm1526_vm7, %v2496_v63, %v1523_v62  ;;  %v3908_v63 = vld [vmem:[#allocation27_spill] sm:$0xff]  ;;  %v3729_v61 = vld [vmem:[#allocation10 + $0xd8] sm:$0xff] }
 0x3aa   :  { %v1532_v18 = vsel %vm1529_vm8, %v1531_v20, %v1527_v25  ;;  %v1551_v22 = vmul.f32 %v1517_v52, %v3552_v35  ;;  %v3727_v58 = vld [vmem:[#allocation10 + $0xc8] sm:$0xff]  ;;  %v3909_v62 = vld [vmem:[#allocation20_spill] sm:$0xff] }
 0x3ab   :  { %v1537_v37 = vmul.f32 %v2498_v9, %v1536_v41  ;;  %v1552_v1 = vmul.f32 %v2500_v4, %v1532_v18  ;;  %v3735_v4 = vld [vmem:[#allocation10 + $0xa0] sm:$0xff]  ;;  %v3737_v41 = vld [vmem:[#allocation10 + $0xa8] sm:$0xff]  ;;  %v3739_v52 = vld [vmem:[#allocation10 + $0xb8] sm:$0xff] }
 0x3ad   :  { %v1538_v3 = vadd.f32 %v2498_v9, %v1537_v37  ;;  %v3618_v30 = vadd.f32 %v1552_v1, %v1551_v22  ;;  %v3744_v22 = vld [vmem:[#allocation10 + $0x80] sm:$0xff]  ;;  %v3746_v37 = vld [vmem:[#allocation10 + $0x88] sm:$0xff] }
 0x3af   :  { %v1542_v50 = vsel %vm1541_vm11, %v2498_v9, %v1538_v3  ;;  %v3753_v3 = vld [vmem:[#allocation10 + $0x60] sm:$0xff] }
 0x3b0   :  { %v1547_v35 = vsel %vm1544_vm12, %v1546_v43, %v1542_v50  ;;  %v3755_v43 = vld [vmem:[#allocation10 + $0x68] sm:$0xff]  ;;  %v3757_v50 = vld [vmem:[#allocation10 + $0x78] sm:$0xff] }
 0x3b1   :  { %v1556_v49 = vmul.f32 %v2502_v48, %v1547_v35  ;;  %v3762_v48 = vld [vmem:[#allocation10 + $0x40] sm:$0xff]  ;;  %v3764_v35 = vld [vmem:[#allocation10 + $0x48] sm:$0xff] }
 0x3b3   :  { %v1560_v6 = vrot.slane %v1556_v49, 1  ;;  %v1561_v57 = vrot.slane %v1556_v49, 2  ;;  %v1562_v13 = vrot.slane %v1556_v49, 3  ;;  %1574 = vst [vmem:[#allocation13 + $0x5] sm:$0x1] %v1556_v49  ;;  %1666 = vmatmul.f32.vlgmr.msra.gmra.mxu0 %v1556_v49  ;;  %1686 = vmatmul.f32.vlgmr.msra.gmra.mxu1 %v1556_v49  ;;  %v1563_v14 = vrot.slane %v1556_v49, 4 }
 0x3b4   :  { %1706 = vmatmul.f32.vlgmr.msra.gmra.mxu2 %v1556_v49  ;;  %1726 = vmatmul.f32.vlgmr.msra.gmra.mxu3 %v1556_v49  ;;  %v1564_v45 = vrot.slane %v1556_v49, 5  ;;  %v1565_v31 = vrot.slane %v1556_v49, 6  ;;  %v1566_v5 = vrot.slane %v1556_v49, 7  ;;  %v3766_v49 = vld [vmem:[#allocation10 + $0x58] sm:$0xff] }
 0x3b5   :  { %1575 = vst [vmem:[#allocation13 + $0xd] sm:$0x1] %v1560_v6  ;;  %2182 = vmatpush.msra.mxu2 %v3554_v42  ;;  %v3642_v42 = vld [vmem:[#allocation10 + $0x1e0] sm:$0xff] }
 0x3b6   :  { %1576 = vst [vmem:[#allocation13 + $0x15] sm:$0x1] %v1561_v57  ;;  %1896 = vmatpush.msrb.mxu0 %v3642_v42  ;;  %v3910_v57 = vld [vmem:[#allocation30_spill] sm:$0xff] }
 0x3b7   :  { %1577 = vst [vmem:[#allocation13 + $0x1d] sm:$0x1] %v1562_v13  ;;  %2183 = vmatpush.msra.mxu2 %v3557_v11  ;;  %v3644_v11 = vld [vmem:[#allocation10 + $0x1e8] sm:$0xff] }
 0x3b8   :  { %1578 = vst [vmem:[#allocation13 + $0x25] sm:$0x1] %v1563_v14  ;;  %1916 = vmatpush.msrb.mxu1 %v3644_v11 }
 0x3b9   :  { %1579 = vst [vmem:[#allocation13 + $0x2d] sm:$0x1] %v1564_v45  ;;  %2184 = vmatpush.msra.mxu2 %v3560_v12  ;;  %v3646_v12 = vld [vmem:[#allocation10 + $0x1f8] sm:$0xff]  ;;  %v3772_v45 = vld [vmem:[#allocation10 + $0x20] sm:$0xff] }
 0x3ba   :  { %1580 = vst [vmem:[#allocation13 + $0x35] sm:$0x1] %v1565_v31  ;;  %1956 = vmatpush.msrb.mxu3 %v3646_v12  ;;  %v3774_v31 = vld [vmem:[#allocation10 + $0x28] sm:$0xff] }
 0x3bb   :  { %1581 = vst [vmem:[#allocation13 + $0x3d] sm:$0x1] %v1566_v5  ;;  %2185 = vmatpush.msra.mxu2 %v3563_v17  ;;  %v3651_v17 = vld [vmem:[#allocation10 + $0x1c0] sm:$0xff]  ;;  %v3776_v5 = vld [vmem:[#allocation10 + $0x38] sm:$0xff] }
 0x3bc   :  { %1897 = vmatpush.msrb.mxu0 %v3651_v17 }
 0x3bd   :  { %2186 = vmatpush.msra.mxu2 %v3566_v19  ;;  %v3653_v19 = vld [vmem:[#allocation10 + $0x1c8] sm:$0xff] }
 0x3be   :  { %1917 = vmatpush.msrb.mxu1 %v3653_v19 }
 0x3bf   :  { %2187 = vmatpush.msra.mxu2 %v3569_v29  ;;  %v3655_v29 = vld [vmem:[#allocation10 + $0x1d8] sm:$0xff] }
 0x3c0   :  { %1957 = vmatpush.msrb.mxu3 %v3655_v29 }
 0x3c1   :  { %2188 = vmatpush.msra.mxu2 %v3574_v60  ;;  %v3660_v60 = vld [vmem:[#allocation10 + $0x1a0] sm:$0xff] }
 0x3c2   :  { %1898 = vmatpush.msrb.mxu0 %v3660_v60 }
 0x3c3   :  { %2189 = vmatpush.msra.mxu2 %v3577_v24  ;;  %v3662_v24 = vld [vmem:[#allocation10 + $0x1a8] sm:$0xff] }
 0x3c4   :  { %1918 = vmatpush.msrb.mxu1 %v3662_v24 }
 0x3c5   :  { %2190 = vmatpush.msra.mxu2 %v3580_v54  ;;  %v3664_v54 = vld [vmem:[#allocation10 + $0x1b8] sm:$0xff] }
 0x3c6   :  { %1958 = vmatpush.msrb.mxu3 %v3664_v54 }
 0x3c7   :  { %2191 = vmatpush.msra.mxu2 %v3583_v28  ;;  %v3669_v28 = vld [vmem:[#allocation10 + $0x180] sm:$0xff] }
 0x3c8   :  { %1899 = vmatpush.msrb.mxu0 %v3669_v28 }
 0x3c9   :  { %2192 = vmatpush.msra.mxu2 %v3587_v44  ;;  %v3671_v44 = vld [vmem:[#allocation10 + $0x188] sm:$0xff] }
 0x3ca   :  { %1919 = vmatpush.msrb.mxu1 %v3671_v44 }
 0x3cb   :  { %2193 = vmatpush.msra.mxu2 %v3590_v32  ;;  %v3673_v32 = vld [vmem:[#allocation10 + $0x198] sm:$0xff] }
 0x3cc   :  { %1959 = vmatpush.msrb.mxu3 %v3673_v32 }
 0x3cd   :  { %2194 = vmatpush.msra.mxu2 %v3593_v7  ;;  %v3678_v7 = vld [vmem:[#allocation10 + $0x160] sm:$0xff] }
 0x3ce   :  { %1900 = vmatpush.msrb.mxu0 %v3678_v7 }
 0x3cf   :  { %2195 = vmatpush.msra.mxu2 %v3596_v56  ;;  %v3680_v56 = vld [vmem:[#allocation10 + $0x168] sm:$0xff] }
 0x3d0   :  { %1920 = vmatpush.msrb.mxu1 %v3680_v56  ;;  %1901 = vmatpush.msrb.mxu0 %v3687_v26 }
 0x3d1   :  { %2196 = vmatpush.msra.mxu2 %v3600_v47  ;;  %v3682_v47 = vld [vmem:[#allocation10 + $0x178] sm:$0xff] }
 0x3d2   :  { %1960 = vmatpush.msrb.mxu3 %v3682_v47  ;;  %1902 = vmatpush.msrb.mxu0 %v3698_v27 }
 0x3d3   :  { %2197 = vmatpush.msra.mxu2 %v3603_v23  ;;  %v3689_v23 = vld [vmem:[#allocation10 + $0x148] sm:$0xff] }
 0x3d4   :  { %1921 = vmatpush.msrb.mxu1 %v3689_v23  ;;  %1961 = vmatpush.msrb.mxu3 %v3691_v38 }
 0x3d5   :  { %1903 = vmatpush.msrb.mxu0 %v3707_v36 }
 0x3d6   :  { %1922 = vmatpush.msrb.mxu1 %v3700_v16  ;;  %1962 = vmatpush.msrb.mxu3 %v3702_v21 }
 0x3d7   :  { %1904 = vmatpush.msrb.mxu0 %v3716_v8 }
 0x3d8   :  { %1923 = vmatpush.msrb.mxu1 %v3709_v55  ;;  %1963 = vmatpush.msrb.mxu3 %v3711_v39 }
 0x3d9   :  { %1905 = vmatpush.msrb.mxu0 %v3725_v51 }
 0x3da   :  { %1924 = vmatpush.msrb.mxu1 %v3718_v34  ;;  %1964 = vmatpush.msrb.mxu3 %v3720_v15 }
 0x3db   :  { %1906 = vmatpush.msrb.mxu0 %v3735_v4 }
 0x3dc   :  { %1925 = vmatpush.msrb.mxu1 %v3727_v58  ;;  %1965 = vmatpush.msrb.mxu3 %v3729_v61 }
 0x3dd   :  { %1907 = vmatpush.msrb.mxu0 %v3744_v22 }
 0x3de   :  { %1926 = vmatpush.msrb.mxu1 %v3737_v41  ;;  %1966 = vmatpush.msrb.mxu3 %v3739_v52 }
 0x3df   :  { %1908 = vmatpush.msrb.mxu0 %v3753_v3 }
 0x3e0   :  { %1927 = vmatpush.msrb.mxu1 %v3746_v37  ;;  %1967 = vmatpush.msrb.mxu3 %v3748_v59 }
 0x3e1   :  { %1909 = vmatpush.msrb.mxu0 %v3762_v48 }
 0x3e2   :  { %1928 = vmatpush.msrb.mxu1 %v3755_v43  ;;  %1968 = vmatpush.msrb.mxu3 %v3757_v50 }
 0x3e3   :  { %1910 = vmatpush.msrb.mxu0 %v3772_v45 }
 0x3e4   :  { %1929 = vmatpush.msrb.mxu1 %v3764_v35  ;;  %1969 = vmatpush.msrb.mxu3 %v3766_v49 }
 0x3e6   :  { %1930 = vmatpush.msrb.mxu1 %v3774_v31  ;;  %1970 = vmatpush.msrb.mxu3 %v3776_v5 }
 0x430   :  { %v1667_v33 = vpop.f32.mrf.mxu0  ;;  %v1687_v0 = vpop.f32.mrf.mxu1 }
 0x431   :  { %v1730_v46 = vadd.f32 %v1667_v33, %v3907_v10  ;;  %v1731_v40 = vadd.f32 %v1687_v0, %v3908_v63  ;;  %v3785_v63 = vld [vmem:[#allocation10 + $0x8] sm:$0xff] }
 0x432   :  { %1931 = vmatpush.msrb.mxu1 %v3785_v63 }
 0x433   :  { %2503 = vtanh.f32 %v1730_v46  ;;  %v3783_v46 = vld [vmem:[#allocation10] sm:$0xff] }
 0x434   :  { %2505 = vtanh.f32 %v1731_v40  ;;  %v3787_v40 = vld [vmem:[#allocation10 + $0x18] sm:$0xff]  ;;  %1911 = vmatpush.msrb.mxu0 %v3783_v46  ;;  %2162 = vmatpush.msra.mxu1 %v3644_v11 }
 0x435   :  { %1971 = vmatpush.msrb.mxu3 %v3787_v40 }
 0x436   :  { %2142 = vmatpush.msra.mxu0 %v3642_v42  ;;  %2163 = vmatpush.msra.mxu1 %v3653_v19 }
 0x437   :  { %v1707_v9 = vpop.f32.mrf.mxu2  ;;  %v1727_v1 = vpop.f32.mrf.mxu3  ;;  %2202 = vmatpush.msra.mxu3 %v3646_v12 }
 0x438   :  { %v1732_v2 = vadd.f32 %v1707_v9, %v3909_v62  ;;  %v1733_v13 = vadd.f32 %v1727_v1, %v3910_v57  ;;  %2143 = vmatpush.msra.mxu0 %v3651_v17  ;;  %2164 = vmatpush.msra.mxu1 %v3662_v24 }
 0x439   :  { %v2504_v20 = vpop.eup %2503  ;;  %2203 = vmatpush.msra.mxu3 %v3655_v29 }
 0x43a   :  { %v2506_v25 = vpop.eup %2505  ;;  %v2364_v53 = vmul.f32 -1.442695, %v2504_v20  ;;  %2507 = vtanh.f32 %v1732_v2  ;;  %2144 = vmatpush.msra.mxu0 %v3660_v60  ;;  %2165 = vmatpush.msra.mxu1 %v3671_v44 }
 0x43b   :  { %v2365_v18 = vmul.f32 -1.442695, %v2506_v25  ;;  %2204 = vmatpush.msra.mxu3 %v3664_v54 }
 0x43c   :  { %2509 = vpow2.f32 %v2364_v53  ;;  %2145 = vmatpush.msra.mxu0 %v3669_v28  ;;  %2166 = vmatpush.msra.mxu1 %v3680_v56 }
 0x43d   :  { %2511 = vpow2.f32 %v2365_v18  ;;  %2205 = vmatpush.msra.mxu3 %v3673_v32 }
 0x43e   :  { %2146 = vmatpush.msra.mxu0 %v3678_v7  ;;  %2167 = vmatpush.msra.mxu1 %v3689_v23 }
 0x43f   :  { %2206 = vmatpush.msra.mxu3 %v3682_v47 }
 0x440   :  { %v2508_v6 = vpop.eup %2507  ;;  %2147 = vmatpush.msra.mxu0 %v3687_v26  ;;  %2168 = vmatpush.msra.mxu1 %v3700_v16 }
 0x441   :  { %v2366_v14 = vmul.f32 -1.442695, %v2508_v6  ;;  %2207 = vmatpush.msra.mxu3 %v3691_v38 }
 0x442   :  { %v2510_v33 = vpop.eup %2509  ;;  %2148 = vmatpush.msra.mxu0 %v3698_v27  ;;  %2169 = vmatpush.msra.mxu1 %v3709_v55 }
 0x443   :  { %v2512_v0 = vpop.eup %2511  ;;  %v3780_v10 = vadd.f32 1.0, %v2510_v33  ;;  %2513 = vpow2.f32 %v2366_v14  ;;  %2208 = vmatpush.msra.mxu3 %v3702_v21 }
 0x444   :  { %v3789_v9 = vadd.f32 1.0, %v2512_v0  ;;  %2515 = vtanh.f32 %v1733_v13  ;;  %2149 = vmatpush.msra.mxu0 %v3707_v36  ;;  %2170 = vmatpush.msra.mxu1 %v3718_v34 }
 0x445   :  { %2517 = vrcp.f32 %v3780_v10  ;;  %v1761_v29 = vand.u32 2147483648, %v3780_v10  ;;  %v1759_v54 = vand.u32 2147483647, %v3780_v10  ;;  %vm1755_vm15 = vweird.f32 %v3780_v10  ;;  %2209 = vmatpush.msra.mxu3 %v3711_v39 }
 0x446   :  { %2519 = vrcp.f32 %v3789_v9  ;;  %v1776_v28 = vand.u32 2147483648, %v3789_v9  ;;  %v1774_v32 = vand.u32 2147483647, %v3789_v9  ;;  %vm1770_vm1 = vweird.f32 %v3789_v9  ;;  %2150 = vmatpush.msra.mxu0 %v3716_v8  ;;  %2171 = vmatpush.msra.mxu1 %v3727_v58 }
 0x447   :  { %v1762_v47 = vor.u32 1.1754944e-38, %v1761_v29  ;;  %vm1760_vm2 = vcmp.eq.f32.partialorder %v1759_v54, 8.507059e+37  ;;  %2210 = vmatpush.msra.mxu3 %v3720_v15 }
 0x448   :  { %v1777_v27 = vor.u32 1.1754944e-38, %v1776_v28  ;;  %vm1775_vm4 = vcmp.eq.f32.partialorder %v1774_v32, 8.507059e+37  ;;  %2151 = vmatpush.msra.mxu0 %v3725_v51  ;;  %2172 = vmatpush.msra.mxu1 %v3737_v41 }
 0x449   :  { %v2514_v62 = vpop.eup %2513  ;;  %2211 = vmatpush.msra.mxu3 %v3729_v61 }
 0x44a   :  { %v2516_v2 = vpop.eup %2515  ;;  %v3803_v20 = vadd.f32 1.0, %v2514_v62  ;;  %2152 = vmatpush.msra.mxu0 %v3735_v4  ;;  %2173 = vmatpush.msra.mxu1 %v3746_v37 }
 0x44b   :  { %v2518_v42 = vpop.eup %2517  ;;  %2212 = vmatpush.msra.mxu3 %v3739_v52 }
 0x44c   :  { %v2520_v11 = vpop.eup %2519  ;;  %v1751_v12 = vmul.f32 %v2518_v42, %v3780_v10  ;;  %2521 = vrcp.f32 %v3803_v20  ;;  %vm1756_vm13 = vweird.f32 %v2518_v42  ;;  %v1791_v36 = vand.u32 2147483648, %v3803_v20  ;;  %2153 = vmatpush.msra.mxu0 %v3744_v22  ;;  %2174 = vmatpush.msra.mxu1 %v3755_v43 }
 0x44d   :  { %v1766_v17 = vmul.f32 %v2520_v11, %v3789_v9  ;;  %2523 = vtanh.f32 %v2516_v2  ;;  %vm1771_vm14 = vweird.f32 %v2520_v11  ;;  %vm1757_vm0 = vmor %vm1755_vm15, %vm1756_vm13  ;;  %v1789_v39 = vand.u32 2147483647, %v3803_v20  ;;  %2213 = vmatpush.msra.mxu3 %v3748_v59 }
 0x44e   :  { %v1752_v19 = vsub.f32 1.0, %v1751_v12  ;;  %vm1772_vm3 = vmor %vm1770_vm1, %vm1771_vm14  ;;  %2525 = vtanh.f32 %v3618_v30  ;;  %vm1785_vm6 = vweird.f32 %v3803_v20  ;;  %2154 = vmatpush.msra.mxu0 %v3753_v3  ;;  %2175 = vmatpush.msra.mxu1 %v3764_v35  ;;  %v3911_v35 = vld [vmem:[#allocation21_spill] sm:$0xff] }
 0x44f   :  { %v1767_v60 = vsub.f32 1.0, %v1766_v17  ;;  %vm1790_vm8 = vcmp.eq.f32.partialorder %v1789_v39, 8.507059e+37  ;;  %2214 = vmatpush.msra.mxu3 %v3757_v50 }
 0x450   :  { %v1753_v24 = vmul.f32 %v2518_v42, %v1752_v19  ;;  %2155 = vmatpush.msra.mxu0 %v3762_v48  ;;  %2176 = vmatpush.msra.mxu1 %v3774_v31 }
 0x451   :  { %v1768_v44 = vmul.f32 %v2520_v11, %v1767_v60  ;;  %2215 = vmatpush.msra.mxu3 %v3766_v49 }
 0x452   :  { %v2522_v7 = vpop.eup %2521  ;;  %v1754_v56 = vadd.f32 %v2518_v42, %v1753_v24  ;;  %2156 = vmatpush.msra.mxu0 %v3772_v45  ;;  %2177 = vmatpush.msra.mxu1 %v3785_v63 }
 0x453   :  { %v1781_v26 = vmul.f32 %v2522_v7, %v3803_v20  ;;  %v1769_v23 = vadd.f32 %v2520_v11, %v1768_v44  ;;  %v2524_v16 = vpop.eup %2523  ;;  %vm1786_vm5 = vweird.f32 %v2522_v7  ;;  %2216 = vmatpush.msra.mxu3 %v3776_v5 }
 0x454   :  { %v1758_v38 = vsel %vm1757_vm0, %v2518_v42, %v1754_v56  ;;  %vm1787_vm7 = vmor %vm1785_vm6, %vm1786_vm5  ;;  %v2526_v15 = vpop.eup %2525  ;;  %2157 = vmatpush.msra.mxu0 %v3783_v46 }
 0x455   :  { %v1782_v21 = vsub.f32 1.0, %v1781_v26  ;;  %v1763_v25 = vsel %vm1760_vm2, %v1762_v47, %v1758_v38  ;;  %v1773_v53 = vsel %vm1772_vm3, %v2520_v11, %v1769_v23  ;;  %2217 = vmatpush.msra.mxu3 %v3787_v40 }
 0x456   :  { %v1778_v18 = vsel %vm1775_vm4, %v1777_v27, %v1773_v53  ;;  %v1797_v1 = vmul.f32 %v1763_v25, %v3618_v30  ;;  %v1792_v30 = vor.u32 1.1754944e-38, %v1791_v36 }
 0x457   :  { %v1783_v55 = vmul.f32 %v2522_v7, %v1782_v21  ;;  %v1798_v6 = vmul.f32 %v2524_v16, %v1778_v18 }
 0x459   :  { %v1784_v8 = vadd.f32 %v2522_v7, %v1783_v55  ;;  %v1799_v57 = vadd.f32 %v1798_v6, %v1797_v1 }
 0x45b   :  { %v1788_v34 = vsel %vm1787_vm7, %v2522_v7, %v1784_v8 }
 0x45c   :  { %v1793_v51 = vsel %vm1790_vm8, %v1792_v30, %v1788_v34 }
 0x45d   :  { %v1802_v58 = vmul.f32 %v2526_v15, %v1793_v51 }
 0x45f   :  { %v1806_v61 = vrot.slane %v1802_v58, 1  ;;  %v1807_v4 = vrot.slane %v1802_v58, 2  ;;  %v1808_v41 = vrot.slane %v1802_v58, 3  ;;  %1820 = vst [vmem:[#allocation13 + $0x6] sm:$0x1] %v1802_v58  ;;  %1912 = vmatmul.f32.vlgmr.msrb.gmra.mxu0 %v1802_v58  ;;  %1932 = vmatmul.f32.vlgmr.msrb.gmra.mxu1 %v1802_v58  ;;  %v1809_v52 = vrot.slane %v1802_v58, 4 }
 0x460   :  { %1952 = vmatmul.f32.vlgmr.msrb.gmra.mxu2 %v1802_v58  ;;  %1972 = vmatmul.f32.vlgmr.msrb.gmra.mxu3 %v1802_v58  ;;  %v1810_v22 = vrot.slane %v1802_v58, 5  ;;  %v1811_v37 = vrot.slane %v1802_v58, 6  ;;  %v1812_v59 = vrot.slane %v1802_v58, 7 }
 0x461   :  { %1821 = vst [vmem:[#allocation13 + $0xe] sm:$0x1] %v1806_v61 }
 0x462   :  { %1822 = vst [vmem:[#allocation13 + $0x16] sm:$0x1] %v1807_v4 }
 0x463   :  { %1823 = vst [vmem:[#allocation13 + $0x1e] sm:$0x1] %v1808_v41 }
 0x464   :  { %1824 = vst [vmem:[#allocation13 + $0x26] sm:$0x1] %v1809_v52 }
 0x465   :  { %1825 = vst [vmem:[#allocation13 + $0x2e] sm:$0x1] %v1810_v22 }
 0x466   :  { %1826 = vst [vmem:[#allocation13 + $0x36] sm:$0x1] %v1811_v37 }
 0x467   :  { %1827 = vst [vmem:[#allocation13 + $0x3e] sm:$0x1] %v1812_v59 }
 0x4dc   :  { %v1913_v3 = vpop.f32.mrf.mxu0  ;;  %v1933_v43 = vpop.f32.mrf.mxu1 }
 0x4e3   :  { %v1953_v50 = vpop.f32.mrf.mxu2  ;;  %v1973_v48 = vpop.f32.mrf.mxu3 }
 0x4e4   :  { %v1978_v49 = vadd.f32 %v1953_v50, %v3911_v35 }
 0x4e6   :  { %2527 = vtanh.f32 %v1978_v49 }
 0x4ec   :  { %v2528_v13 = vpop.eup %2527 }
 0x4ed   :  { %v2369_v14 = vmul.f32 -1.442695, %v2528_v13 }
 0x4ef   :  { %2529 = vpow2.f32 %v2369_v14 }
 0x4f5   :  { %v2530_v45 = vpop.eup %2529 }
 0x4f6   :  { %v1995_v31 = vadd.f32 1.0, %v2530_v45 }
 0x4f8   :  { %2531 = vrcp.f32 %v1995_v31  ;;  %v2037_v10 = vand.u32 2147483648, %v1995_v31  ;;  %v2035_v63 = vand.u32 2147483647, %v1995_v31  ;;  %vm2031_vm10 = vweird.f32 %v1995_v31 }
 0x4f9   :  { %2533 = vtanh.f32 %v1799_v57 }
 0x4fa   :  { %v2038_v9 = vor.u32 1.1754944e-38, %v2037_v10  ;;  %vm2036_vm12 = vcmp.eq.f32.partialorder %v2035_v63, 8.507059e+37 }
 0x4fe   :  { %v2532_v5 = vpop.eup %2531 }
 0x4ff   :  { %v2027_v33 = vmul.f32 %v2532_v5, %v1995_v31  ;;  %vm2032_vm9 = vweird.f32 %v2532_v5  ;;  %v2534_v2 = vpop.eup %2533 }
 0x500   :  { %vm2033_vm11 = vmor %vm2031_vm10, %vm2032_vm9 }
 0x501   :  { %v2028_v0 = vsub.f32 1.0, %v2027_v33 }
 0x503   :  { %v2029_v46 = vmul.f32 %v2532_v5, %v2028_v0 }
 0x505   :  { %v2030_v40 = vadd.f32 %v2532_v5, %v2029_v46 }
 0x507   :  { %v2034_v62 = vsel %vm2033_vm11, %v2532_v5, %v2030_v40 }
 0x508   :  { %v2039_v20 = vsel %vm2036_vm12, %v2038_v9, %v2034_v62 }
 0x509   :  { %v2048_v42 = vmul.f32 %v2534_v2, %v2039_v20 }
 0x50b   :  { %v2052_v11 = vrot.slane %v2048_v42, 1  ;;  %v2053_v12 = vrot.slane %v2048_v42, 2  ;;  %v2054_v17 = vrot.slane %v2048_v42, 3  ;;  %2066 = vst [vmem:[#allocation13 + $0x7] sm:$0x1] %v2048_v42  ;;  %2158 = vmatmul.f32.vlgmr.msra.gmra.mxu0 %v2048_v42  ;;  %2178 = vmatmul.f32.vlgmr.msra.gmra.mxu1 %v2048_v42  ;;  %v2055_v19 = vrot.slane %v2048_v42, 4 }
 0x50c   :  { %2198 = vmatmul.f32.vlgmr.msra.gmra.mxu2 %v2048_v42  ;;  %2218 = vmatmul.f32.vlgmr.msra.gmra.mxu3 %v2048_v42  ;;  %v2056_v29 = vrot.slane %v2048_v42, 5  ;;  %v2057_v60 = vrot.slane %v2048_v42, 6  ;;  %v2058_v24 = vrot.slane %v2048_v42, 7 }
 0x50d   :  { %2067 = vst [vmem:[#allocation13 + $0xf] sm:$0x1] %v2052_v11 }
 0x50e   :  { %2068 = vst [vmem:[#allocation13 + $0x17] sm:$0x1] %v2053_v12 }
 0x50f   :  { %2069 = vst [vmem:[#allocation13 + $0x1f] sm:$0x1] %v2054_v17 }
 0x510   :  { %2070 = vst [vmem:[#allocation13 + $0x27] sm:$0x1] %v2055_v19 }
 0x511   :  { %2071 = vst [vmem:[#allocation13 + $0x2f] sm:$0x1] %v2056_v29 }
 0x512   :  { %2072 = vst [vmem:[#allocation13 + $0x37] sm:$0x1] %v2057_v60 }
 0x513   :  { %2073 = vst [vmem:[#allocation13 + $0x3f] sm:$0x1] %v2058_v24 }
 0x514   :  { %2308 = dma.vmem_to_hbm [thread:$0]  %s2301_s13, 1024, %s2303_s11, [#allocation7], %s2667_s27, %s2667_s27, %s2668_s28  }
 0x588   :  { %v2159_v54 = vpop.f32.mrf.mxu0  ;;  %v2179_v28 = vpop.f32.mrf.mxu1 }
 0x58f   :  { %v2199_v44 = vpop.f32.mrf.mxu2  ;;  %v2219_v32 = vpop.f32.mrf.mxu3 }
 0x590   :  { %2661 = dma.done.wait [#allocation7], 1024  }
 0x591   :  { %2662 = vsyncadd [#allocation7], 4294966272 }
 0x592   :  { %2313 = vsyncpa [#allocation6], 1 }
 0x593   :  { %2314 = vsyncpa [#allocation9], 1 }
 0x594   :  { %2315 = vsyncpa [#allocation12], 1 }
 0x595   :  { %2316 = vsyncpa [#allocation7], 1 }

</bundles_post_ra>
